<compile_context>
chip_gen: v7x
topology: tpu7x:2x2x1
jax: 0.10.0
libtpu: 0.0.40
codegen_flags: <defaults>
</compile_context>

<pallas_src>
import functools

import jax
import jax.numpy as jnp
from jax.experimental import pallas as pl
from jax.experimental.pallas import tpu as pltpu


# ----------------------------- Pallas kernel --------------------------------

def mvtae_kernel(xflat_ref,        # (T*Bp, Din) f32, time-major rows
                 enc_w_ref,        # (Din_p + H + 1, 4H) bf16: [wih_e; whh_e; b_e]
                 dec_w_ref,        # (2H + 1, 4H)        bf16: [wih_d; whh_d; b_d]
                 head_ref,         # (H + 2, Dout + A)   f32: wdo/bdo/wa1/ba1/wao/bao
                 out_ref,          # (Bp, H + T*Dout + 1) f32: [hsv | dec | alpha]
                 *, dout):
    TB, Din = xflat_ref.shape
    Bp = out_ref.shape[0]
    T = TB // Bp
    H = enc_w_ref.shape[1] // 4
    A = head_ref.shape[1] - dout
    Din_p = enc_w_ref.shape[0] - H - 1          # wih_e block padded to sublane

    def cell(gates, h, c):
        # g-gate columns were pre-scaled by 2 -> one full-width sigmoid,
        # tanh(g) = 2*sigmoid(2g) - 1
        s = jax.nn.sigmoid(gates)
        i = s[:, 0:H]
        f = s[:, H:2 * H]
        g = 2.0 * s[:, 2 * H:3 * H] - 1.0
        o = s[:, 3 * H:4 * H]
        c_new = f * c + i * g
        return o * jnp.tanh(c_new), c_new

    # ---------------- encoder LSTM ------------------------------------------
    wih_e = enc_w_ref[0:Din, :]                               # bf16 (Din, 4H)
    whh_e = enc_w_ref[Din_p:Din_p + H, :]                     # bf16 (H, 4H)
    b_e = enc_w_ref[Din_p + H:Din_p + H + 1, :].astype(jnp.float32)

    # one matmul for ALL time steps (non-recurrent work off the serial chain)
    x_proj = jnp.dot(xflat_ref[...].astype(jnp.bfloat16), wih_e,
                     preferred_element_type=jnp.float32) + b_e

    h = jnp.zeros((Bp, H), jnp.float32)
    c = jnp.zeros((Bp, H), jnp.float32)
    for t in range(T):                                        # T small, unrolled
        gates = x_proj[t * Bp:(t + 1) * Bp, :] + jnp.dot(
            h.astype(jnp.bfloat16), whh_e, preferred_element_type=jnp.float32)
        h, c = cell(gates, h, c)

    # ---------------- alpha head (depends only on encoder h) ----------------
    wdo = head_ref[0:H, 0:dout]
    bdo = head_ref[H:H + 1, 0:dout]
    wa1 = head_ref[0:H, dout:dout + A]
    ba1 = head_ref[H:H + 1, dout:dout + A]
    wao = head_ref[H + 1:H + 2, dout:dout + A]
    bao = head_ref[H + 1:H + 2, 0:1]

    a1 = jnp.maximum(
        jnp.dot(h, wa1, preferred_element_type=jnp.float32) + ba1, 0.0)
    # dropout is identity: the module calls self.eval() in __init__
    alpha = jax.nn.sigmoid(jnp.sum(a1 * wao, axis=-1, keepdims=True) + bao)

    # ---------------- decoder LSTM ------------------------------------------
    # Input at every step is the same repeated encoder hidden vector, so its
    # input projection is computed once.  Decoder initial state is zero.
    wih_d = dec_w_ref[0:H, :]
    whh_d = dec_w_ref[H:2 * H, :]
    b_d = dec_w_ref[2 * H:2 * H + 1, :].astype(jnp.float32)

    dxp = jnp.dot(h.astype(jnp.bfloat16), wih_d,
                  preferred_element_type=jnp.float32) + b_d

    hd = jnp.zeros((Bp, H), jnp.float32)
    cd = jnp.zeros((Bp, H), jnp.float32)
    dec_cols = []
    for t in range(T):
        gates = dxp + jnp.dot(hd.astype(jnp.bfloat16), whh_d,
                              preferred_element_type=jnp.float32)
        hd, cd = cell(gates, hd, cd)
        # output projection per step: depends on hd but never feeds back, so
        # it sits off the recurrent critical path
        dec_cols.append(
            jnp.dot(hd, wdo, preferred_element_type=jnp.float32) + bdo)

    # single store of the whole output slab: [hsv | dec (t-major cols) | alpha]
    out_ref[...] = jnp.concatenate([h] + dec_cols + [alpha], axis=1)


# ----------------------------- parameter packing (one time) ------------------

def pack_params(params):
    """Fold gate scaling, pack 13 tensors into 3 weight slabs, cast to bf16.

    Done once at model-load time, not per forward call.
    """
    Din = params["wih_e"].shape[0]
    H = params["whh_e"].shape[0]
    Dout = params["wdo"].shape[1]
    A = params["wa1"].shape[1]

    # Fold a x2 scale into the g-gate columns (2H:3H) so the kernel applies a
    # single full-width sigmoid and recovers tanh(g) = 2*sigmoid(2g) - 1.
    gsc = jnp.concatenate([jnp.ones((1, 2 * H), jnp.float32),
                           jnp.full((1, H), 2.0, jnp.float32),
                           jnp.ones((1, H), jnp.float32)], axis=1)

    Din_p = ((Din + 7) // 8) * 8   # pad wih_e block so whh_e starts sublane-aligned
    wih_e = jnp.zeros((Din_p, 4 * H), jnp.float32).at[:Din].set(
        params["wih_e"] * gsc)
    enc_slab = jnp.concatenate(
        [wih_e, params["whh_e"] * gsc, params["b_e"] * gsc],
        axis=0).astype(jnp.bfloat16)
    dec_slab = jnp.concatenate(
        [params["wih_d"] * gsc, params["whh_d"] * gsc, params["b_d"] * gsc],
        axis=0).astype(jnp.bfloat16)

    head = jnp.zeros((H + 2, Dout + A), jnp.float32)
    head = head.at[0:H, 0:Dout].set(params["wdo"])
    head = head.at[H, 0:Dout].set(params["bdo"][0])
    head = head.at[0:H, Dout:Dout + A].set(params["wa1"])
    head = head.at[H, Dout:Dout + A].set(params["ba1"][0])
    head = head.at[H + 1, Dout:Dout + A].set(params["wao"][0])
    head = head.at[H + 1, 0].set(params["bao"][0, 0])

    return {"enc": enc_slab, "dec": dec_slab, "head": head,
            "H": H, "Dout": Dout, "A": A}


# ----------------------------- wrapper ---------------------------------------

def mvtae_forward(x, packed):
    B, T, Din = x.shape
    H, Dout = packed["H"], packed["Dout"]

    # Pad batch to the sublane width (8): per-step latency is flat in rows up
    # to the MXU height, padded rows are sliced off afterwards.
    Bp = max(8, ((B + 7) // 8) * 8)
    if Bp != B:
        x = jnp.pad(x, ((0, Bp - B), (0, 0), (0, 0)))

    # time-major flat layout: row t*Bp + b corresponds to (t, b)
    x_flat = jnp.transpose(x, (1, 0, 2)).reshape(T * Bp, Din)

    vmem = pl.BlockSpec(memory_space=pltpu.MemorySpace.VMEM)
    out = pl.pallas_call(
        functools.partial(mvtae_kernel, dout=Dout),
        out_shape=jax.ShapeDtypeStruct((Bp, H + T * Dout + 1), jnp.float32),
        in_specs=[vmem, vmem, vmem, vmem],
        out_specs=vmem,
    )(x_flat, packed["enc"], packed["dec"], packed["head"])

    hsv = out[:B, 0:H][None, :, :]                             # (1, B, H)
    dec = out[:B, H:H + T * Dout].reshape(B, T, Dout)          # (B, T, Dout)
    # torch: alpha_out_2.squeeze() on (1, B, 1) -> (B,)
    alpha = jnp.squeeze(out[:B, H + T * Dout])
    return hsv, dec, alpha


# ----------------------------- reference (pure JAX, f32) ----------------------

def mvtae_reference(x, p):
    B, T, _ = x.shape
    H = p["whh_e"].shape[0]

    def cell(xp, h, c, whh):
        g = xp + h @ whh
        i = jax.nn.sigmoid(g[:, :H]); f = jax.nn.sigmoid(g[:, H:2 * H])
        gg = jnp.tanh(g[:, 2 * H:3 * H]); o = jax.nn.sigmoid(g[:, 3 * H:])
        c = f * c + i * gg
        return o * jnp.tanh(c), c

    h = jnp.zeros((B, H)); c = jnp.zeros((B, H))
    for t in range(T):
        h, c = cell(x[:, t, :] @ p["wih_e"] + p["b_e"], h, c, p["whh_e"])
    hsv = h[None]
    dxp = h @ p["wih_d"] + p["b_d"]
    hd = jnp.zeros((B, H)); cd = jnp.zeros((B, H))
    outs = []
    for t in range(T):
        hd, cd = cell(dxp, hd, cd, p["whh_d"])
        outs.append(hd @ p["wdo"] + p["bdo"])
    dec = jnp.stack(outs, axis=1)
    a1 = jnp.maximum(h @ p["wa1"] + p["ba1"], 0.0)
    alpha = jax.nn.sigmoid(jnp.sum(a1 * p["wao"], -1, keepdims=True) + p["bao"])
    return hsv, dec, jnp.squeeze(alpha)


# ----------------------------- parameter init ---------------------------------

def init_params(key, Din, H, A, Dout):
    ks = jax.random.split(key, 16)
    u = lambda k, shape, s: jax.random.uniform(k, shape, jnp.float32, -s, s)
    sH = 1.0 / float(H) ** 0.5
    sA = 1.0 / float(A) ** 0.5
    return {
        # encoder LSTM (weights stored transposed: (in, 4H); gate order i,f,g,o)
        "wih_e": u(ks[0], (Din, 4 * H), sH),
        "whh_e": u(ks[1], (H, 4 * H), sH),
        "b_e":   u(ks[2], (1, 4 * H), sH) + u(ks[3], (1, 4 * H), sH),
        # decoder LSTM
        "wih_d": u(ks[4], (H, 4 * H), sH),
        "whh_d": u(ks[5], (H, 4 * H), sH),
        "b_d":   u(ks[6], (1, 4 * H), sH) + u(ks[7], (1, 4 * H), sH),
        # decoder_output Linear(H, Dout)
        "wdo":   u(ks[8], (H, Dout), sH),
        "bdo":   u(ks[9], (1, Dout), sH),
        # alpha_hidden_1 Linear(H, A)
        "wa1":   u(ks[10], (H, A), sH),
        "ba1":   u(ks[11], (1, A), sH),
        # alpha_out_1 Linear(A, 1)  (row vector form for an in-kernel reduction)
        "wao":   u(ks[12], (1, A), sA),
        "bao":   u(ks[13], (1, 1), sA),
        # TODO(synk): alpha_hidden_2 Linear(A, A) exists in __init__ but is
        # never used in forward(), so it is intentionally omitted.
    }


# ----------------------------- main -------------------------------------------

if __name__ == "__main__":
    B, T = 2, 8                 # batch, seq_len
    Din, Dout = 4, 4            # in_data_dims, out_data_dims
    H, A = 32, 16               # hidden_vector_size, hidden_alpha_size

    key = jax.random.PRNGKey(0)
    kx, kp = jax.random.split(key)
    x = jax.random.normal(kx, (B, T, Din), jnp.float32)
    params = init_params(kp, Din, H, A, Dout)
    packed = pack_params(params)          # one-time weight preparation

    hsv, dec_out, alpha = jax.block_until_ready(mvtae_forward(x, packed))

    # sanity check against a pure-JAX f32 reference (kernel runs the recurrent
    # matmuls with bf16 operands, hence the slightly relaxed tolerance)
    hsv_r, dec_r, alpha_r = mvtae_reference(x, params)
    assert hsv.shape == (1, B, H) and dec_out.shape == (B, T, Dout) and alpha.shape == (B,)
    assert jnp.allclose(hsv, hsv_r, atol=2e-2, rtol=2e-2)
    assert jnp.allclose(dec_out, dec_r, atol=2e-2, rtol=2e-2)
    assert jnp.allclose(alpha, alpha_r, atol=2e-2, rtol=2e-2)

    print("KERNEL_OK")
</pallas_src>

<mosaic_0001>
module attributes {stable_mosaic.version = 11 : i64} {
  func.func @mvtae_kernel(%arg0: memref<64x4xf32, #tpu.memory_space<vmem>>, %arg1: memref<41x128xbf16, #tpu.memory_space<vmem>>, %arg2: memref<65x128xbf16, #tpu.memory_space<vmem>>, %arg3: memref<34x20xf32, #tpu.memory_space<vmem>>, %arg4: memref<8x65xf32, #tpu.memory_space<vmem>>) attributes {dimension_semantics = [], scalar_prefetch = 0 : i64, scratch_operands = 0 : i64, tpu.core_type = #tpu.core_type<tc>} {
    %c0 = arith.constant 0 : index
    %c0_0 = arith.constant 0 : index
    %0 = vector.load %arg1[%c0, %c0_0] : memref<41x128xbf16, #tpu.memory_space<vmem>>, vector<4x128xbf16>
    %c8 = arith.constant 8 : index
    %c0_1 = arith.constant 0 : index
    %1 = vector.load %arg1[%c8, %c0_1] : memref<41x128xbf16, #tpu.memory_space<vmem>>, vector<32x128xbf16>
    %c40 = arith.constant 40 : index
    %c0_2 = arith.constant 0 : index
    %2 = vector.load %arg1[%c40, %c0_2] : memref<41x128xbf16, #tpu.memory_space<vmem>>, vector<1x128xbf16>
    %3 = arith.extf %2 : vector<1x128xbf16> to vector<1x128xf32>
    %c0_3 = arith.constant 0 : index
    %c0_4 = arith.constant 0 : index
    %4 = vector.load %arg0[%c0_3, %c0_4] : memref<64x4xf32, #tpu.memory_space<vmem>>, vector<64x4xf32>
    %5 = arith.truncf %4 : vector<64x4xf32> to vector<64x4xbf16>
    %cst = arith.constant dense<0.000000e+00> : vector<64x128xf32>
    %6 = tpu.matmul %5, %0, %cst {dimension_numbers = #tpu.dot_dimension_numbers<[1], [0], [0], [1], [0, 0, 1, 1], [], []>} : vector<64x4xbf16>, vector<4x128xbf16>, vector<64x128xf32> -> vector<64x128xf32>
    %7 = vector.broadcast %3 : vector<1x128xf32> to vector<64x128xf32>
    %8 = arith.addf %6, %7 : vector<64x128xf32>
    %cst_5 = arith.constant 0.000000e+00 : f32
    %9 = vector.broadcast %cst_5 : f32 to vector<8x32xf32>
    %cst_6 = arith.constant 0.000000e+00 : f32
    %10 = vector.broadcast %cst_6 : f32 to vector<8x32xf32>
    %11 = vector.extract_strided_slice %8 {offsets = [0, 0], sizes = [8, 128], strides = [1, 1]} : vector<64x128xf32> to vector<8x128xf32>
    %12 = arith.truncf %9 : vector<8x32xf32> to vector<8x32xbf16>
    %cst_7 = arith.constant dense<0.000000e+00> : vector<8x128xf32>
    %13 = tpu.matmul %12, %1, %cst_7 {dimension_numbers = #tpu.dot_dimension_numbers<[1], [0], [0], [1], [0, 0, 1, 1], [], []>} : vector<8x32xbf16>, vector<32x128xbf16>, vector<8x128xf32> -> vector<8x128xf32>
    %14 = arith.addf %11, %13 : vector<8x128xf32>
    %15 = arith.negf %14 : vector<8x128xf32>
    %16 = math.exp %15 : vector<8x128xf32>
    %cst_8 = arith.constant 1.000000e+00 : f32
    %17 = vector.broadcast %cst_8 : f32 to vector<8x128xf32>
    %18 = arith.addf %17, %16 : vector<8x128xf32>
    %19 = arith.divf %17, %18 : vector<8x128xf32>
    %20 = vector.extract_strided_slice %19 {offsets = [0, 0], sizes = [8, 32], strides = [1, 1]} : vector<8x128xf32> to vector<8x32xf32>
    %21 = vector.extract_strided_slice %19 {offsets = [0, 32], sizes = [8, 32], strides = [1, 1]} : vector<8x128xf32> to vector<8x32xf32>
    %22 = vector.extract_strided_slice %19 {offsets = [0, 64], sizes = [8, 32], strides = [1, 1]} : vector<8x128xf32> to vector<8x32xf32>
    %cst_9 = arith.constant 2.000000e+00 : f32
    %23 = vector.broadcast %cst_9 : f32 to vector<8x32xf32>
    %24 = arith.mulf %23, %22 : vector<8x32xf32>
    %cst_10 = arith.constant 1.000000e+00 : f32
    %25 = vector.broadcast %cst_10 : f32 to vector<8x32xf32>
    %26 = arith.subf %24, %25 : vector<8x32xf32>
    %27 = vector.extract_strided_slice %19 {offsets = [0, 96], sizes = [8, 32], strides = [1, 1]} : vector<8x128xf32> to vector<8x32xf32>
    %28 = arith.mulf %21, %10 : vector<8x32xf32>
    %29 = arith.mulf %20, %26 : vector<8x32xf32>
    %30 = arith.addf %28, %29 : vector<8x32xf32>
    %31 = math.tanh %30 : vector<8x32xf32>
    %32 = arith.mulf %27, %31 : vector<8x32xf32>
    %33 = vector.extract_strided_slice %8 {offsets = [8, 0], sizes = [8, 128], strides = [1, 1]} : vector<64x128xf32> to vector<8x128xf32>
    %34 = arith.truncf %32 : vector<8x32xf32> to vector<8x32xbf16>
    %cst_11 = arith.constant dense<0.000000e+00> : vector<8x128xf32>
    %35 = tpu.matmul %34, %1, %cst_11 {dimension_numbers = #tpu.dot_dimension_numbers<[1], [0], [0], [1], [0, 0, 1, 1], [], []>} : vector<8x32xbf16>, vector<32x128xbf16>, vector<8x128xf32> -> vector<8x128xf32>
    %36 = arith.addf %33, %35 : vector<8x128xf32>
    %37 = arith.negf %36 : vector<8x128xf32>
    %38 = math.exp %37 : vector<8x128xf32>
    %cst_12 = arith.constant 1.000000e+00 : f32
    %39 = vector.broadcast %cst_12 : f32 to vector<8x128xf32>
    %40 = arith.addf %39, %38 : vector<8x128xf32>
    %41 = arith.divf %39, %40 : vector<8x128xf32>
    %42 = vector.extract_strided_slice %41 {offsets = [0, 0], sizes = [8, 32], strides = [1, 1]} : vector<8x128xf32> to vector<8x32xf32>
    %43 = vector.extract_strided_slice %41 {offsets = [0, 32], sizes = [8, 32], strides = [1, 1]} : vector<8x128xf32> to vector<8x32xf32>
    %44 = vector.extract_strided_slice %41 {offsets = [0, 64], sizes = [8, 32], strides = [1, 1]} : vector<8x128xf32> to vector<8x32xf32>
    %cst_13 = arith.constant 2.000000e+00 : f32
    %45 = vector.broadcast %cst_13 : f32 to vector<8x32xf32>
    %46 = arith.mulf %45, %44 : vector<8x32xf32>
    %cst_14 = arith.constant 1.000000e+00 : f32
    %47 = vector.broadcast %cst_14 : f32 to vector<8x32xf32>
    %48 = arith.subf %46, %47 : vector<8x32xf32>
    %49 = vector.extract_strided_slice %41 {offsets = [0, 96], sizes = [8, 32], strides = [1, 1]} : vector<8x128xf32> to vector<8x32xf32>
    %50 = arith.mulf %43, %30 : vector<8x32xf32>
    %51 = arith.mulf %42, %48 : vector<8x32xf32>
    %52 = arith.addf %50, %51 : vector<8x32xf32>
    %53 = math.tanh %52 : vector<8x32xf32>
    %54 = arith.mulf %49, %53 : vector<8x32xf32>
    %55 = vector.extract_strided_slice %8 {offsets = [16, 0], sizes = [8, 128], strides = [1, 1]} : vector<64x128xf32> to vector<8x128xf32>
    %56 = arith.truncf %54 : vector<8x32xf32> to vector<8x32xbf16>
    %cst_15 = arith.constant dense<0.000000e+00> : vector<8x128xf32>
    %57 = tpu.matmul %56, %1, %cst_15 {dimension_numbers = #tpu.dot_dimension_numbers<[1], [0], [0], [1], [0, 0, 1, 1], [], []>} : vector<8x32xbf16>, vector<32x128xbf16>, vector<8x128xf32> -> vector<8x128xf32>
    %58 = arith.addf %55, %57 : vector<8x128xf32>
    %59 = arith.negf %58 : vector<8x128xf32>
    %60 = math.exp %59 : vector<8x128xf32>
    %cst_16 = arith.constant 1.000000e+00 : f32
    %61 = vector.broadcast %cst_16 : f32 to vector<8x128xf32>
    %62 = arith.addf %61, %60 : vector<8x128xf32>
    %63 = arith.divf %61, %62 : vector<8x128xf32>
    %64 = vector.extract_strided_slice %63 {offsets = [0, 0], sizes = [8, 32], strides = [1, 1]} : vector<8x128xf32> to vector<8x32xf32>
    %65 = vector.extract_strided_slice %63 {offsets = [0, 32], sizes = [8, 32], strides = [1, 1]} : vector<8x128xf32> to vector<8x32xf32>
    %66 = vector.extract_strided_slice %63 {offsets = [0, 64], sizes = [8, 32], strides = [1, 1]} : vector<8x128xf32> to vector<8x32xf32>
    %cst_17 = arith.constant 2.000000e+00 : f32
    %67 = vector.broadcast %cst_17 : f32 to vector<8x32xf32>
    %68 = arith.mulf %67, %66 : vector<8x32xf32>
    %cst_18 = arith.constant 1.000000e+00 : f32
    %69 = vector.broadcast %cst_18 : f32 to vector<8x32xf32>
    %70 = arith.subf %68, %69 : vector<8x32xf32>
    %71 = vector.extract_strided_slice %63 {offsets = [0, 96], sizes = [8, 32], strides = [1, 1]} : vector<8x128xf32> to vector<8x32xf32>
    %72 = arith.mulf %65, %52 : vector<8x32xf32>
    %73 = arith.mulf %64, %70 : vector<8x32xf32>
    %74 = arith.addf %72, %73 : vector<8x32xf32>
    %75 = math.tanh %74 : vector<8x32xf32>
    %76 = arith.mulf %71, %75 : vector<8x32xf32>
    %77 = vector.extract_strided_slice %8 {offsets = [24, 0], sizes = [8, 128], strides = [1, 1]} : vector<64x128xf32> to vector<8x128xf32>
    %78 = arith.truncf %76 : vector<8x32xf32> to vector<8x32xbf16>
    %cst_19 = arith.constant dense<0.000000e+00> : vector<8x128xf32>
    %79 = tpu.matmul %78, %1, %cst_19 {dimension_numbers = #tpu.dot_dimension_numbers<[1], [0], [0], [1], [0, 0, 1, 1], [], []>} : vector<8x32xbf16>, vector<32x128xbf16>, vector<8x128xf32> -> vector<8x128xf32>
    %80 = arith.addf %77, %79 : vector<8x128xf32>
    %81 = arith.negf %80 : vector<8x128xf32>
    %82 = math.exp %81 : vector<8x128xf32>
    %cst_20 = arith.constant 1.000000e+00 : f32
    %83 = vector.broadcast %cst_20 : f32 to vector<8x128xf32>
    %84 = arith.addf %83, %82 : vector<8x128xf32>
    %85 = arith.divf %83, %84 : vector<8x128xf32>
    %86 = vector.extract_strided_slice %85 {offsets = [0, 0], sizes = [8, 32], strides = [1, 1]} : vector<8x128xf32> to vector<8x32xf32>
    %87 = vector.extract_strided_slice %85 {offsets = [0, 32], sizes = [8, 32], strides = [1, 1]} : vector<8x128xf32> to vector<8x32xf32>
    %88 = vector.extract_strided_slice %85 {offsets = [0, 64], sizes = [8, 32], strides = [1, 1]} : vector<8x128xf32> to vector<8x32xf32>
    %cst_21 = arith.constant 2.000000e+00 : f32
    %89 = vector.broadcast %cst_21 : f32 to vector<8x32xf32>
    %90 = arith.mulf %89, %88 : vector<8x32xf32>
    %cst_22 = arith.constant 1.000000e+00 : f32
    %91 = vector.broadcast %cst_22 : f32 to vector<8x32xf32>
    %92 = arith.subf %90, %91 : vector<8x32xf32>
    %93 = vector.extract_strided_slice %85 {offsets = [0, 96], sizes = [8, 32], strides = [1, 1]} : vector<8x128xf32> to vector<8x32xf32>
    %94 = arith.mulf %87, %74 : vector<8x32xf32>
    %95 = arith.mulf %86, %92 : vector<8x32xf32>
    %96 = arith.addf %94, %95 : vector<8x32xf32>
    %97 = math.tanh %96 : vector<8x32xf32>
    %98 = arith.mulf %93, %97 : vector<8x32xf32>
    %99 = vector.extract_strided_slice %8 {offsets = [32, 0], sizes = [8, 128], strides = [1, 1]} : vector<64x128xf32> to vector<8x128xf32>
    %100 = arith.truncf %98 : vector<8x32xf32> to vector<8x32xbf16>
    %cst_23 = arith.constant dense<0.000000e+00> : vector<8x128xf32>
    %101 = tpu.matmul %100, %1, %cst_23 {dimension_numbers = #tpu.dot_dimension_numbers<[1], [0], [0], [1], [0, 0, 1, 1], [], []>} : vector<8x32xbf16>, vector<32x128xbf16>, vector<8x128xf32> -> vector<8x128xf32>
    %102 = arith.addf %99, %101 : vector<8x128xf32>
    %103 = arith.negf %102 : vector<8x128xf32>
    %104 = math.exp %103 : vector<8x128xf32>
    %cst_24 = arith.constant 1.000000e+00 : f32
    %105 = vector.broadcast %cst_24 : f32 to vector<8x128xf32>
    %106 = arith.addf %105, %104 : vector<8x128xf32>
    %107 = arith.divf %105, %106 : vector<8x128xf32>
    %108 = vector.extract_strided_slice %107 {offsets = [0, 0], sizes = [8, 32], strides = [1, 1]} : vector<8x128xf32> to vector<8x32xf32>
    %109 = vector.extract_strided_slice %107 {offsets = [0, 32], sizes = [8, 32], strides = [1, 1]} : vector<8x128xf32> to vector<8x32xf32>
    %110 = vector.extract_strided_slice %107 {offsets = [0, 64], sizes = [8, 32], strides = [1, 1]} : vector<8x128xf32> to vector<8x32xf32>
    %cst_25 = arith.constant 2.000000e+00 : f32
    %111 = vector.broadcast %cst_25 : f32 to vector<8x32xf32>
    %112 = arith.mulf %111, %110 : vector<8x32xf32>
    %cst_26 = arith.constant 1.000000e+00 : f32
    %113 = vector.broadcast %cst_26 : f32 to vector<8x32xf32>
    %114 = arith.subf %112, %113 : vector<8x32xf32>
    %115 = vector.extract_strided_slice %107 {offsets = [0, 96], sizes = [8, 32], strides = [1, 1]} : vector<8x128xf32> to vector<8x32xf32>
    %116 = arith.mulf %109, %96 : vector<8x32xf32>
    %117 = arith.mulf %108, %114 : vector<8x32xf32>
    %118 = arith.addf %116, %117 : vector<8x32xf32>
    %119 = math.tanh %118 : vector<8x32xf32>
    %120 = arith.mulf %115, %119 : vector<8x32xf32>
    %121 = vector.extract_strided_slice %8 {offsets = [40, 0], sizes = [8, 128], strides = [1, 1]} : vector<64x128xf32> to vector<8x128xf32>
    %122 = arith.truncf %120 : vector<8x32xf32> to vector<8x32xbf16>
    %cst_27 = arith.constant dense<0.000000e+00> : vector<8x128xf32>
    %123 = tpu.matmul %122, %1, %cst_27 {dimension_numbers = #tpu.dot_dimension_numbers<[1], [0], [0], [1], [0, 0, 1, 1], [], []>} : vector<8x32xbf16>, vector<32x128xbf16>, vector<8x128xf32> -> vector<8x128xf32>
    %124 = arith.addf %121, %123 : vector<8x128xf32>
    %125 = arith.negf %124 : vector<8x128xf32>
    %126 = math.exp %125 : vector<8x128xf32>
    %cst_28 = arith.constant 1.000000e+00 : f32
    %127 = vector.broadcast %cst_28 : f32 to vector<8x128xf32>
    %128 = arith.addf %127, %126 : vector<8x128xf32>
    %129 = arith.divf %127, %128 : vector<8x128xf32>
    %130 = vector.extract_strided_slice %129 {offsets = [0, 0], sizes = [8, 32], strides = [1, 1]} : vector<8x128xf32> to vector<8x32xf32>
    %131 = vector.extract_strided_slice %129 {offsets = [0, 32], sizes = [8, 32], strides = [1, 1]} : vector<8x128xf32> to vector<8x32xf32>
    %132 = vector.extract_strided_slice %129 {offsets = [0, 64], sizes = [8, 32], strides = [1, 1]} : vector<8x128xf32> to vector<8x32xf32>
    %cst_29 = arith.constant 2.000000e+00 : f32
    %133 = vector.broadcast %cst_29 : f32 to vector<8x32xf32>
    %134 = arith.mulf %133, %132 : vector<8x32xf32>
    %cst_30 = arith.constant 1.000000e+00 : f32
    %135 = vector.broadcast %cst_30 : f32 to vector<8x32xf32>
    %136 = arith.subf %134, %135 : vector<8x32xf32>
    %137 = vector.extract_strided_slice %129 {offsets = [0, 96], sizes = [8, 32], strides = [1, 1]} : vector<8x128xf32> to vector<8x32xf32>
    %138 = arith.mulf %131, %118 : vector<8x32xf32>
    %139 = arith.mulf %130, %136 : vector<8x32xf32>
    %140 = arith.addf %138, %139 : vector<8x32xf32>
    %141 = math.tanh %140 : vector<8x32xf32>
    %142 = arith.mulf %137, %141 : vector<8x32xf32>
    %143 = vector.extract_strided_slice %8 {offsets = [48, 0], sizes = [8, 128], strides = [1, 1]} : vector<64x128xf32> to vector<8x128xf32>
    %144 = arith.truncf %142 : vector<8x32xf32> to vector<8x32xbf16>
    %cst_31 = arith.constant dense<0.000000e+00> : vector<8x128xf32>
    %145 = tpu.matmul %144, %1, %cst_31 {dimension_numbers = #tpu.dot_dimension_numbers<[1], [0], [0], [1], [0, 0, 1, 1], [], []>} : vector<8x32xbf16>, vector<32x128xbf16>, vector<8x128xf32> -> vector<8x128xf32>
    %146 = arith.addf %143, %145 : vector<8x128xf32>
    %147 = arith.negf %146 : vector<8x128xf32>
    %148 = math.exp %147 : vector<8x128xf32>
    %cst_32 = arith.constant 1.000000e+00 : f32
    %149 = vector.broadcast %cst_32 : f32 to vector<8x128xf32>
    %150 = arith.addf %149, %148 : vector<8x128xf32>
    %151 = arith.divf %149, %150 : vector<8x128xf32>
    %152 = vector.extract_strided_slice %151 {offsets = [0, 0], sizes = [8, 32], strides = [1, 1]} : vector<8x128xf32> to vector<8x32xf32>
    %153 = vector.extract_strided_slice %151 {offsets = [0, 32], sizes = [8, 32], strides = [1, 1]} : vector<8x128xf32> to vector<8x32xf32>
    %154 = vector.extract_strided_slice %151 {offsets = [0, 64], sizes = [8, 32], strides = [1, 1]} : vector<8x128xf32> to vector<8x32xf32>
    %cst_33 = arith.constant 2.000000e+00 : f32
    %155 = vector.broadcast %cst_33 : f32 to vector<8x32xf32>
    %156 = arith.mulf %155, %154 : vector<8x32xf32>
    %cst_34 = arith.constant 1.000000e+00 : f32
    %157 = vector.broadcast %cst_34 : f32 to vector<8x32xf32>
    %158 = arith.subf %156, %157 : vector<8x32xf32>
    %159 = vector.extract_strided_slice %151 {offsets = [0, 96], sizes = [8, 32], strides = [1, 1]} : vector<8x128xf32> to vector<8x32xf32>
    %160 = arith.mulf %153, %140 : vector<8x32xf32>
    %161 = arith.mulf %152, %158 : vector<8x32xf32>
    %162 = arith.addf %160, %161 : vector<8x32xf32>
    %163 = math.tanh %162 : vector<8x32xf32>
    %164 = arith.mulf %159, %163 : vector<8x32xf32>
    %165 = vector.extract_strided_slice %8 {offsets = [56, 0], sizes = [8, 128], strides = [1, 1]} : vector<64x128xf32> to vector<8x128xf32>
    %166 = arith.truncf %164 : vector<8x32xf32> to vector<8x32xbf16>
    %cst_35 = arith.constant dense<0.000000e+00> : vector<8x128xf32>
    %167 = tpu.matmul %166, %1, %cst_35 {dimension_numbers = #tpu.dot_dimension_numbers<[1], [0], [0], [1], [0, 0, 1, 1], [], []>} : vector<8x32xbf16>, vector<32x128xbf16>, vector<8x128xf32> -> vector<8x128xf32>
    %168 = arith.addf %165, %167 : vector<8x128xf32>
    %169 = arith.negf %168 : vector<8x128xf32>
    %170 = math.exp %169 : vector<8x128xf32>
    %cst_36 = arith.constant 1.000000e+00 : f32
    %171 = vector.broadcast %cst_36 : f32 to vector<8x128xf32>
    %172 = arith.addf %171, %170 : vector<8x128xf32>
    %173 = arith.divf %171, %172 : vector<8x128xf32>
    %174 = vector.extract_strided_slice %173 {offsets = [0, 0], sizes = [8, 32], strides = [1, 1]} : vector<8x128xf32> to vector<8x32xf32>
    %175 = vector.extract_strided_slice %173 {offsets = [0, 32], sizes = [8, 32], strides = [1, 1]} : vector<8x128xf32> to vector<8x32xf32>
    %176 = vector.extract_strided_slice %173 {offsets = [0, 64], sizes = [8, 32], strides = [1, 1]} : vector<8x128xf32> to vector<8x32xf32>
    %cst_37 = arith.constant 2.000000e+00 : f32
    %177 = vector.broadcast %cst_37 : f32 to vector<8x32xf32>
    %178 = arith.mulf %177, %176 : vector<8x32xf32>
    %cst_38 = arith.constant 1.000000e+00 : f32
    %179 = vector.broadcast %cst_38 : f32 to vector<8x32xf32>
    %180 = arith.subf %178, %179 : vector<8x32xf32>
    %181 = vector.extract_strided_slice %173 {offsets = [0, 96], sizes = [8, 32], strides = [1, 1]} : vector<8x128xf32> to vector<8x32xf32>
    %182 = arith.mulf %175, %162 : vector<8x32xf32>
    %183 = arith.mulf %174, %180 : vector<8x32xf32>
    %184 = arith.addf %182, %183 : vector<8x32xf32>
    %185 = math.tanh %184 : vector<8x32xf32>
    %186 = arith.mulf %181, %185 : vector<8x32xf32>
    %c0_39 = arith.constant 0 : index
    %c0_40 = arith.constant 0 : index
    %187 = vector.load %arg3[%c0_39, %c0_40] : memref<34x20xf32, #tpu.memory_space<vmem>>, vector<32x4xf32>
    %c32 = arith.constant 32 : index
    %c0_41 = arith.constant 0 : index
    %188 = vector.load %arg3[%c32, %c0_41] : memref<34x20xf32, #tpu.memory_space<vmem>>, vector<1x4xf32>
    %c0_42 = arith.constant 0 : index
    %c4 = arith.constant 4 : index
    %189 = vector.load %arg3[%c0_42, %c4] : memref<34x20xf32, #tpu.memory_space<vmem>>, vector<32x16xf32>
    %c32_43 = arith.constant 32 : index
    %c4_44 = arith.constant 4 : index
    %190 = vector.load %arg3[%c32_43, %c4_44] : memref<34x20xf32, #tpu.memory_space<vmem>>, vector<1x16xf32>
    %c33 = arith.constant 33 : index
    %c4_45 = arith.constant 4 : index
    %191 = vector.load %arg3[%c33, %c4_45] : memref<34x20xf32, #tpu.memory_space<vmem>>, vector<1x16xf32>
    %c33_46 = arith.constant 33 : index
    %c0_47 = arith.constant 0 : index
    %192 = vector.load %arg3[%c33_46, %c0_47] : memref<34x20xf32, #tpu.memory_space<vmem>>, vector<1x1xf32>
    %cst_48 = arith.constant dense<0.000000e+00> : vector<8x16xf32>
    %193 = tpu.matmul %186, %189, %cst_48 {dimension_numbers = #tpu.dot_dimension_numbers<[1], [0], [0], [1], [0, 0, 1, 1], [], []>} : vector<8x32xf32>, vector<32x16xf32>, vector<8x16xf32> -> vector<8x16xf32>
    %194 = vector.broadcast %190 : vector<1x16xf32> to vector<8x16xf32>
    %195 = arith.addf %193, %194 : vector<8x16xf32>
    %cst_49 = arith.constant 0.000000e+00 : f32
    %196 = vector.broadcast %cst_49 : f32 to vector<8x16xf32>
    %197 = arith.maximumf %195, %196 : vector<8x16xf32>
    %198 = vector.broadcast %191 : vector<1x16xf32> to vector<8x16xf32>
    %199 = arith.mulf %197, %198 : vector<8x16xf32>
    %cst_50 = arith.constant dense<0.000000e+00> : vector<8xf32>
    %200 = vector.multi_reduction <add>, %199, %cst_50 [1] : vector<8x16xf32> to vector<8xf32>
    %201 = vector.shape_cast %200 : vector<8xf32> to vector<8x1xf32>
    %202 = vector.broadcast %192 : vector<1x1xf32> to vector<8x1xf32>
    %203 = arith.addf %201, %202 : vector<8x1xf32>
    %204 = arith.negf %203 : vector<8x1xf32>
    %205 = math.exp %204 : vector<8x1xf32>
    %cst_51 = arith.constant 1.000000e+00 : f32
    %206 = vector.broadcast %cst_51 : f32 to vector<8x1xf32>
    %207 = arith.addf %206, %205 : vector<8x1xf32>
    %208 = arith.divf %206, %207 : vector<8x1xf32>
    %c0_52 = arith.constant 0 : index
    %c0_53 = arith.constant 0 : index
    %209 = vector.load %arg2[%c0_52, %c0_53] : memref<65x128xbf16, #tpu.memory_space<vmem>>, vector<32x128xbf16>
    %c32_54 = arith.constant 32 : index
    %c0_55 = arith.constant 0 : index
    %210 = vector.load %arg2[%c32_54, %c0_55] : memref<65x128xbf16, #tpu.memory_space<vmem>>, vector<32x128xbf16>
    %c64 = arith.constant 64 : index
    %c0_56 = arith.constant 0 : index
    %211 = vector.load %arg2[%c64, %c0_56] : memref<65x128xbf16, #tpu.memory_space<vmem>>, vector<1x128xbf16>
    %212 = arith.extf %211 : vector<1x128xbf16> to vector<1x128xf32>
    %213 = arith.truncf %186 : vector<8x32xf32> to vector<8x32xbf16>
    %cst_57 = arith.constant dense<0.000000e+00> : vector<8x128xf32>
    %214 = tpu.matmul %213, %209, %cst_57 {dimension_numbers = #tpu.dot_dimension_numbers<[1], [0], [0], [1], [0, 0, 1, 1], [], []>} : vector<8x32xbf16>, vector<32x128xbf16>, vector<8x128xf32> -> vector<8x128xf32>
    %215 = vector.broadcast %212 : vector<1x128xf32> to vector<8x128xf32>
    %216 = arith.addf %214, %215 : vector<8x128xf32>
    %cst_58 = arith.constant 0.000000e+00 : f32
    %217 = vector.broadcast %cst_58 : f32 to vector<8x32xf32>
    %cst_59 = arith.constant 0.000000e+00 : f32
    %218 = vector.broadcast %cst_59 : f32 to vector<8x32xf32>
    %219 = arith.truncf %217 : vector<8x32xf32> to vector<8x32xbf16>
    %cst_60 = arith.constant dense<0.000000e+00> : vector<8x128xf32>
    %220 = tpu.matmul %219, %210, %cst_60 {dimension_numbers = #tpu.dot_dimension_numbers<[1], [0], [0], [1], [0, 0, 1, 1], [], []>} : vector<8x32xbf16>, vector<32x128xbf16>, vector<8x128xf32> -> vector<8x128xf32>
    %221 = arith.addf %216, %220 : vector<8x128xf32>
    %222 = arith.negf %221 : vector<8x128xf32>
    %223 = math.exp %222 : vector<8x128xf32>
    %cst_61 = arith.constant 1.000000e+00 : f32
    %224 = vector.broadcast %cst_61 : f32 to vector<8x128xf32>
    %225 = arith.addf %224, %223 : vector<8x128xf32>
    %226 = arith.divf %224, %225 : vector<8x128xf32>
    %227 = vector.extract_strided_slice %226 {offsets = [0, 0], sizes = [8, 32], strides = [1, 1]} : vector<8x128xf32> to vector<8x32xf32>
    %228 = vector.extract_strided_slice %226 {offsets = [0, 32], sizes = [8, 32], strides = [1, 1]} : vector<8x128xf32> to vector<8x32xf32>
    %229 = vector.extract_strided_slice %226 {offsets = [0, 64], sizes = [8, 32], strides = [1, 1]} : vector<8x128xf32> to vector<8x32xf32>
    %cst_62 = arith.constant 2.000000e+00 : f32
    %230 = vector.broadcast %cst_62 : f32 to vector<8x32xf32>
    %231 = arith.mulf %230, %229 : vector<8x32xf32>
    %cst_63 = arith.constant 1.000000e+00 : f32
    %232 = vector.broadcast %cst_63 : f32 to vector<8x32xf32>
    %233 = arith.subf %231, %232 : vector<8x32xf32>
    %234 = vector.extract_strided_slice %226 {offsets = [0, 96], sizes = [8, 32], strides = [1, 1]} : vector<8x128xf32> to vector<8x32xf32>
    %235 = arith.mulf %228, %218 : vector<8x32xf32>
    %236 = arith.mulf %227, %233 : vector<8x32xf32>
    %237 = arith.addf %235, %236 : vector<8x32xf32>
    %238 = math.tanh %237 : vector<8x32xf32>
    %239 = arith.mulf %234, %238 : vector<8x32xf32>
    %cst_64 = arith.constant dense<0.000000e+00> : vector<8x4xf32>
    %240 = tpu.matmul %239, %187, %cst_64 {dimension_numbers = #tpu.dot_dimension_numbers<[1], [0], [0], [1], [0, 0, 1, 1], [], []>} : vector<8x32xf32>, vector<32x4xf32>, vector<8x4xf32> -> vector<8x4xf32>
    %241 = vector.broadcast %188 : vector<1x4xf32> to vector<8x4xf32>
    %242 = arith.addf %240, %241 : vector<8x4xf32>
    %243 = arith.truncf %239 : vector<8x32xf32> to vector<8x32xbf16>
    %cst_65 = arith.constant dense<0.000000e+00> : vector<8x128xf32>
    %244 = tpu.matmul %243, %210, %cst_65 {dimension_numbers = #tpu.dot_dimension_numbers<[1], [0], [0], [1], [0, 0, 1, 1], [], []>} : vector<8x32xbf16>, vector<32x128xbf16>, vector<8x128xf32> -> vector<8x128xf32>
    %245 = arith.addf %216, %244 : vector<8x128xf32>
    %246 = arith.negf %245 : vector<8x128xf32>
    %247 = math.exp %246 : vector<8x128xf32>
    %cst_66 = arith.constant 1.000000e+00 : f32
    %248 = vector.broadcast %cst_66 : f32 to vector<8x128xf32>
    %249 = arith.addf %248, %247 : vector<8x128xf32>
    %250 = arith.divf %248, %249 : vector<8x128xf32>
    %251 = vector.extract_strided_slice %250 {offsets = [0, 0], sizes = [8, 32], strides = [1, 1]} : vector<8x128xf32> to vector<8x32xf32>
    %252 = vector.extract_strided_slice %250 {offsets = [0, 32], sizes = [8, 32], strides = [1, 1]} : vector<8x128xf32> to vector<8x32xf32>
    %253 = vector.extract_strided_slice %250 {offsets = [0, 64], sizes = [8, 32], strides = [1, 1]} : vector<8x128xf32> to vector<8x32xf32>
    %cst_67 = arith.constant 2.000000e+00 : f32
    %254 = vector.broadcast %cst_67 : f32 to vector<8x32xf32>
    %255 = arith.mulf %254, %253 : vector<8x32xf32>
    %cst_68 = arith.constant 1.000000e+00 : f32
    %256 = vector.broadcast %cst_68 : f32 to vector<8x32xf32>
    %257 = arith.subf %255, %256 : vector<8x32xf32>
    %258 = vector.extract_strided_slice %250 {offsets = [0, 96], sizes = [8, 32], strides = [1, 1]} : vector<8x128xf32> to vector<8x32xf32>
    %259 = arith.mulf %252, %237 : vector<8x32xf32>
    %260 = arith.mulf %251, %257 : vector<8x32xf32>
    %261 = arith.addf %259, %260 : vector<8x32xf32>
    %262 = math.tanh %261 : vector<8x32xf32>
    %263 = arith.mulf %258, %262 : vector<8x32xf32>
    %cst_69 = arith.constant dense<0.000000e+00> : vector<8x4xf32>
    %264 = tpu.matmul %263, %187, %cst_69 {dimension_numbers = #tpu.dot_dimension_numbers<[1], [0], [0], [1], [0, 0, 1, 1], [], []>} : vector<8x32xf32>, vector<32x4xf32>, vector<8x4xf32> -> vector<8x4xf32>
    %265 = vector.broadcast %188 : vector<1x4xf32> to vector<8x4xf32>
    %266 = arith.addf %264, %265 : vector<8x4xf32>
    %267 = arith.truncf %263 : vector<8x32xf32> to vector<8x32xbf16>
    %cst_70 = arith.constant dense<0.000000e+00> : vector<8x128xf32>
    %268 = tpu.matmul %267, %210, %cst_70 {dimension_numbers = #tpu.dot_dimension_numbers<[1], [0], [0], [1], [0, 0, 1, 1], [], []>} : vector<8x32xbf16>, vector<32x128xbf16>, vector<8x128xf32> -> vector<8x128xf32>
    %269 = arith.addf %216, %268 : vector<8x128xf32>
    %270 = arith.negf %269 : vector<8x128xf32>
    %271 = math.exp %270 : vector<8x128xf32>
    %cst_71 = arith.constant 1.000000e+00 : f32
    %272 = vector.broadcast %cst_71 : f32 to vector<8x128xf32>
    %273 = arith.addf %272, %271 : vector<8x128xf32>
    %274 = arith.divf %272, %273 : vector<8x128xf32>
    %275 = vector.extract_strided_slice %274 {offsets = [0, 0], sizes = [8, 32], strides = [1, 1]} : vector<8x128xf32> to vector<8x32xf32>
    %276 = vector.extract_strided_slice %274 {offsets = [0, 32], sizes = [8, 32], strides = [1, 1]} : vector<8x128xf32> to vector<8x32xf32>
    %277 = vector.extract_strided_slice %274 {offsets = [0, 64], sizes = [8, 32], strides = [1, 1]} : vector<8x128xf32> to vector<8x32xf32>
    %cst_72 = arith.constant 2.000000e+00 : f32
    %278 = vector.broadcast %cst_72 : f32 to vector<8x32xf32>
    %279 = arith.mulf %278, %277 : vector<8x32xf32>
    %cst_73 = arith.constant 1.000000e+00 : f32
    %280 = vector.broadcast %cst_73 : f32 to vector<8x32xf32>
    %281 = arith.subf %279, %280 : vector<8x32xf32>
    %282 = vector.extract_strided_slice %274 {offsets = [0, 96], sizes = [8, 32], strides = [1, 1]} : vector<8x128xf32> to vector<8x32xf32>
    %283 = arith.mulf %276, %261 : vector<8x32xf32>
    %284 = arith.mulf %275, %281 : vector<8x32xf32>
    %285 = arith.addf %283, %284 : vector<8x32xf32>
    %286 = math.tanh %285 : vector<8x32xf32>
    %287 = arith.mulf %282, %286 : vector<8x32xf32>
    %cst_74 = arith.constant dense<0.000000e+00> : vector<8x4xf32>
    %288 = tpu.matmul %287, %187, %cst_74 {dimension_numbers = #tpu.dot_dimension_numbers<[1], [0], [0], [1], [0, 0, 1, 1], [], []>} : vector<8x32xf32>, vector<32x4xf32>, vector<8x4xf32> -> vector<8x4xf32>
    %289 = vector.broadcast %188 : vector<1x4xf32> to vector<8x4xf32>
    %290 = arith.addf %288, %289 : vector<8x4xf32>
    %291 = arith.truncf %287 : vector<8x32xf32> to vector<8x32xbf16>
    %cst_75 = arith.constant dense<0.000000e+00> : vector<8x128xf32>
    %292 = tpu.matmul %291, %210, %cst_75 {dimension_numbers = #tpu.dot_dimension_numbers<[1], [0], [0], [1], [0, 0, 1, 1], [], []>} : vector<8x32xbf16>, vector<32x128xbf16>, vector<8x128xf32> -> vector<8x128xf32>
    %293 = arith.addf %216, %292 : vector<8x128xf32>
    %294 = arith.negf %293 : vector<8x128xf32>
    %295 = math.exp %294 : vector<8x128xf32>
    %cst_76 = arith.constant 1.000000e+00 : f32
    %296 = vector.broadcast %cst_76 : f32 to vector<8x128xf32>
    %297 = arith.addf %296, %295 : vector<8x128xf32>
    %298 = arith.divf %296, %297 : vector<8x128xf32>
    %299 = vector.extract_strided_slice %298 {offsets = [0, 0], sizes = [8, 32], strides = [1, 1]} : vector<8x128xf32> to vector<8x32xf32>
    %300 = vector.extract_strided_slice %298 {offsets = [0, 32], sizes = [8, 32], strides = [1, 1]} : vector<8x128xf32> to vector<8x32xf32>
    %301 = vector.extract_strided_slice %298 {offsets = [0, 64], sizes = [8, 32], strides = [1, 1]} : vector<8x128xf32> to vector<8x32xf32>
    %cst_77 = arith.constant 2.000000e+00 : f32
    %302 = vector.broadcast %cst_77 : f32 to vector<8x32xf32>
    %303 = arith.mulf %302, %301 : vector<8x32xf32>
    %cst_78 = arith.constant 1.000000e+00 : f32
    %304 = vector.broadcast %cst_78 : f32 to vector<8x32xf32>
    %305 = arith.subf %303, %304 : vector<8x32xf32>
    %306 = vector.extract_strided_slice %298 {offsets = [0, 96], sizes = [8, 32], strides = [1, 1]} : vector<8x128xf32> to vector<8x32xf32>
    %307 = arith.mulf %300, %285 : vector<8x32xf32>
    %308 = arith.mulf %299, %305 : vector<8x32xf32>
    %309 = arith.addf %307, %308 : vector<8x32xf32>
    %310 = math.tanh %309 : vector<8x32xf32>
    %311 = arith.mulf %306, %310 : vector<8x32xf32>
    %cst_79 = arith.constant dense<0.000000e+00> : vector<8x4xf32>
    %312 = tpu.matmul %311, %187, %cst_79 {dimension_numbers = #tpu.dot_dimension_numbers<[1], [0], [0], [1], [0, 0, 1, 1], [], []>} : vector<8x32xf32>, vector<32x4xf32>, vector<8x4xf32> -> vector<8x4xf32>
    %313 = vector.broadcast %188 : vector<1x4xf32> to vector<8x4xf32>
    %314 = arith.addf %312, %313 : vector<8x4xf32>
    %315 = arith.truncf %311 : vector<8x32xf32> to vector<8x32xbf16>
    %cst_80 = arith.constant dense<0.000000e+00> : vector<8x128xf32>
    %316 = tpu.matmul %315, %210, %cst_80 {dimension_numbers = #tpu.dot_dimension_numbers<[1], [0], [0], [1], [0, 0, 1, 1], [], []>} : vector<8x32xbf16>, vector<32x128xbf16>, vector<8x128xf32> -> vector<8x128xf32>
    %317 = arith.addf %216, %316 : vector<8x128xf32>
    %318 = arith.negf %317 : vector<8x128xf32>
    %319 = math.exp %318 : vector<8x128xf32>
    %cst_81 = arith.constant 1.000000e+00 : f32
    %320 = vector.broadcast %cst_81 : f32 to vector<8x128xf32>
    %321 = arith.addf %320, %319 : vector<8x128xf32>
    %322 = arith.divf %320, %321 : vector<8x128xf32>
    %323 = vector.extract_strided_slice %322 {offsets = [0, 0], sizes = [8, 32], strides = [1, 1]} : vector<8x128xf32> to vector<8x32xf32>
    %324 = vector.extract_strided_slice %322 {offsets = [0, 32], sizes = [8, 32], strides = [1, 1]} : vector<8x128xf32> to vector<8x32xf32>
    %325 = vector.extract_strided_slice %322 {offsets = [0, 64], sizes = [8, 32], strides = [1, 1]} : vector<8x128xf32> to vector<8x32xf32>
    %cst_82 = arith.constant 2.000000e+00 : f32
    %326 = vector.broadcast %cst_82 : f32 to vector<8x32xf32>
    %327 = arith.mulf %326, %325 : vector<8x32xf32>
    %cst_83 = arith.constant 1.000000e+00 : f32
    %328 = vector.broadcast %cst_83 : f32 to vector<8x32xf32>
    %329 = arith.subf %327, %328 : vector<8x32xf32>
    %330 = vector.extract_strided_slice %322 {offsets = [0, 96], sizes = [8, 32], strides = [1, 1]} : vector<8x128xf32> to vector<8x32xf32>
    %331 = arith.mulf %324, %309 : vector<8x32xf32>
    %332 = arith.mulf %323, %329 : vector<8x32xf32>
    %333 = arith.addf %331, %332 : vector<8x32xf32>
    %334 = math.tanh %333 : vector<8x32xf32>
    %335 = arith.mulf %330, %334 : vector<8x32xf32>
    %cst_84 = arith.constant dense<0.000000e+00> : vector<8x4xf32>
    %336 = tpu.matmul %335, %187, %cst_84 {dimension_numbers = #tpu.dot_dimension_numbers<[1], [0], [0], [1], [0, 0, 1, 1], [], []>} : vector<8x32xf32>, vector<32x4xf32>, vector<8x4xf32> -> vector<8x4xf32>
    %337 = vector.broadcast %188 : vector<1x4xf32> to vector<8x4xf32>
    %338 = arith.addf %336, %337 : vector<8x4xf32>
    %339 = arith.truncf %335 : vector<8x32xf32> to vector<8x32xbf16>
    %cst_85 = arith.constant dense<0.000000e+00> : vector<8x128xf32>
    %340 = tpu.matmul %339, %210, %cst_85 {dimension_numbers = #tpu.dot_dimension_numbers<[1], [0], [0], [1], [0, 0, 1, 1], [], []>} : vector<8x32xbf16>, vector<32x128xbf16>, vector<8x128xf32> -> vector<8x128xf32>
    %341 = arith.addf %216, %340 : vector<8x128xf32>
    %342 = arith.negf %341 : vector<8x128xf32>
    %343 = math.exp %342 : vector<8x128xf32>
    %cst_86 = arith.constant 1.000000e+00 : f32
    %344 = vector.broadcast %cst_86 : f32 to vector<8x128xf32>
    %345 = arith.addf %344, %343 : vector<8x128xf32>
    %346 = arith.divf %344, %345 : vector<8x128xf32>
    %347 = vector.extract_strided_slice %346 {offsets = [0, 0], sizes = [8, 32], strides = [1, 1]} : vector<8x128xf32> to vector<8x32xf32>
    %348 = vector.extract_strided_slice %346 {offsets = [0, 32], sizes = [8, 32], strides = [1, 1]} : vector<8x128xf32> to vector<8x32xf32>
    %349 = vector.extract_strided_slice %346 {offsets = [0, 64], sizes = [8, 32], strides = [1, 1]} : vector<8x128xf32> to vector<8x32xf32>
    %cst_87 = arith.constant 2.000000e+00 : f32
    %350 = vector.broadcast %cst_87 : f32 to vector<8x32xf32>
    %351 = arith.mulf %350, %349 : vector<8x32xf32>
    %cst_88 = arith.constant 1.000000e+00 : f32
    %352 = vector.broadcast %cst_88 : f32 to vector<8x32xf32>
    %353 = arith.subf %351, %352 : vector<8x32xf32>
    %354 = vector.extract_strided_slice %346 {offsets = [0, 96], sizes = [8, 32], strides = [1, 1]} : vector<8x128xf32> to vector<8x32xf32>
    %355 = arith.mulf %348, %333 : vector<8x32xf32>
    %356 = arith.mulf %347, %353 : vector<8x32xf32>
    %357 = arith.addf %355, %356 : vector<8x32xf32>
    %358 = math.tanh %357 : vector<8x32xf32>
    %359 = arith.mulf %354, %358 : vector<8x32xf32>
    %cst_89 = arith.constant dense<0.000000e+00> : vector<8x4xf32>
    %360 = tpu.matmul %359, %187, %cst_89 {dimension_numbers = #tpu.dot_dimension_numbers<[1], [0], [0], [1], [0, 0, 1, 1], [], []>} : vector<8x32xf32>, vector<32x4xf32>, vector<8x4xf32> -> vector<8x4xf32>
    %361 = vector.broadcast %188 : vector<1x4xf32> to vector<8x4xf32>
    %362 = arith.addf %360, %361 : vector<8x4xf32>
    %363 = arith.truncf %359 : vector<8x32xf32> to vector<8x32xbf16>
    %cst_90 = arith.constant dense<0.000000e+00> : vector<8x128xf32>
    %364 = tpu.matmul %363, %210, %cst_90 {dimension_numbers = #tpu.dot_dimension_numbers<[1], [0], [0], [1], [0, 0, 1, 1], [], []>} : vector<8x32xbf16>, vector<32x128xbf16>, vector<8x128xf32> -> vector<8x128xf32>
    %365 = arith.addf %216, %364 : vector<8x128xf32>
    %366 = arith.negf %365 : vector<8x128xf32>
    %367 = math.exp %366 : vector<8x128xf32>
    %cst_91 = arith.constant 1.000000e+00 : f32
    %368 = vector.broadcast %cst_91 : f32 to vector<8x128xf32>
    %369 = arith.addf %368, %367 : vector<8x128xf32>
    %370 = arith.divf %368, %369 : vector<8x128xf32>
    %371 = vector.extract_strided_slice %370 {offsets = [0, 0], sizes = [8, 32], strides = [1, 1]} : vector<8x128xf32> to vector<8x32xf32>
    %372 = vector.extract_strided_slice %370 {offsets = [0, 32], sizes = [8, 32], strides = [1, 1]} : vector<8x128xf32> to vector<8x32xf32>
    %373 = vector.extract_strided_slice %370 {offsets = [0, 64], sizes = [8, 32], strides = [1, 1]} : vector<8x128xf32> to vector<8x32xf32>
    %cst_92 = arith.constant 2.000000e+00 : f32
    %374 = vector.broadcast %cst_92 : f32 to vector<8x32xf32>
    %375 = arith.mulf %374, %373 : vector<8x32xf32>
    %cst_93 = arith.constant 1.000000e+00 : f32
    %376 = vector.broadcast %cst_93 : f32 to vector<8x32xf32>
    %377 = arith.subf %375, %376 : vector<8x32xf32>
    %378 = vector.extract_strided_slice %370 {offsets = [0, 96], sizes = [8, 32], strides = [1, 1]} : vector<8x128xf32> to vector<8x32xf32>
    %379 = arith.mulf %372, %357 : vector<8x32xf32>
    %380 = arith.mulf %371, %377 : vector<8x32xf32>
    %381 = arith.addf %379, %380 : vector<8x32xf32>
    %382 = math.tanh %381 : vector<8x32xf32>
    %383 = arith.mulf %378, %382 : vector<8x32xf32>
    %cst_94 = arith.constant dense<0.000000e+00> : vector<8x4xf32>
    %384 = tpu.matmul %383, %187, %cst_94 {dimension_numbers = #tpu.dot_dimension_numbers<[1], [0], [0], [1], [0, 0, 1, 1], [], []>} : vector<8x32xf32>, vector<32x4xf32>, vector<8x4xf32> -> vector<8x4xf32>
    %385 = vector.broadcast %188 : vector<1x4xf32> to vector<8x4xf32>
    %386 = arith.addf %384, %385 : vector<8x4xf32>
    %387 = arith.truncf %383 : vector<8x32xf32> to vector<8x32xbf16>
    %cst_95 = arith.constant dense<0.000000e+00> : vector<8x128xf32>
    %388 = tpu.matmul %387, %210, %cst_95 {dimension_numbers = #tpu.dot_dimension_numbers<[1], [0], [0], [1], [0, 0, 1, 1], [], []>} : vector<8x32xbf16>, vector<32x128xbf16>, vector<8x128xf32> -> vector<8x128xf32>
    %389 = arith.addf %216, %388 : vector<8x128xf32>
    %390 = arith.negf %389 : vector<8x128xf32>
    %391 = math.exp %390 : vector<8x128xf32>
    %cst_96 = arith.constant 1.000000e+00 : f32
    %392 = vector.broadcast %cst_96 : f32 to vector<8x128xf32>
    %393 = arith.addf %392, %391 : vector<8x128xf32>
    %394 = arith.divf %392, %393 : vector<8x128xf32>
    %395 = vector.extract_strided_slice %394 {offsets = [0, 0], sizes = [8, 32], strides = [1, 1]} : vector<8x128xf32> to vector<8x32xf32>
    %396 = vector.extract_strided_slice %394 {offsets = [0, 32], sizes = [8, 32], strides = [1, 1]} : vector<8x128xf32> to vector<8x32xf32>
    %397 = vector.extract_strided_slice %394 {offsets = [0, 64], sizes = [8, 32], strides = [1, 1]} : vector<8x128xf32> to vector<8x32xf32>
    %cst_97 = arith.constant 2.000000e+00 : f32
    %398 = vector.broadcast %cst_97 : f32 to vector<8x32xf32>
    %399 = arith.mulf %398, %397 : vector<8x32xf32>
    %cst_98 = arith.constant 1.000000e+00 : f32
    %400 = vector.broadcast %cst_98 : f32 to vector<8x32xf32>
    %401 = arith.subf %399, %400 : vector<8x32xf32>
    %402 = vector.extract_strided_slice %394 {offsets = [0, 96], sizes = [8, 32], strides = [1, 1]} : vector<8x128xf32> to vector<8x32xf32>
    %403 = arith.mulf %396, %381 : vector<8x32xf32>
    %404 = arith.mulf %395, %401 : vector<8x32xf32>
    %405 = arith.addf %403, %404 : vector<8x32xf32>
    %406 = math.tanh %405 : vector<8x32xf32>
    %407 = arith.mulf %402, %406 : vector<8x32xf32>
    %cst_99 = arith.constant dense<0.000000e+00> : vector<8x4xf32>
    %408 = tpu.matmul %407, %187, %cst_99 {dimension_numbers = #tpu.dot_dimension_numbers<[1], [0], [0], [1], [0, 0, 1, 1], [], []>} : vector<8x32xf32>, vector<32x4xf32>, vector<8x4xf32> -> vector<8x4xf32>
    %409 = vector.broadcast %188 : vector<1x4xf32> to vector<8x4xf32>
    %410 = arith.addf %408, %409 : vector<8x4xf32>
    %411 = tpu.concatenate %186, %242, %266, %290, %314, %338, %362, %386, %410, %208 in 1 : vector<8x32xf32>, vector<8x4xf32>, vector<8x4xf32>, vector<8x4xf32>, vector<8x4xf32>, vector<8x4xf32>, vector<8x4xf32>, vector<8x4xf32>, vector<8x4xf32>, vector<8x1xf32> -> vector<8x65xf32>
    %c0_100 = arith.constant 0 : index
    %c0_101 = arith.constant 0 : index
    %412 = vector.load %arg4[%c0_100, %c0_101] : memref<8x65xf32, #tpu.memory_space<vmem>>, vector<8x65xf32>
    tpu.vector_store %arg4[%c0_100, %c0_101], %411 {strides = array<i32>} : memref<8x65xf32, #tpu.memory_space<vmem>>, vector<8x65xf32>,
    return
  }
}

</mosaic_0001>

<bundles_post_ra>
// kernel: tpu_custom_call.1
= control target key start
LH: loop header
LB: loop body
LE: loop exit
PB: predicated region body
PF: predicated region fallthrough
CT: control target
= control target key end

     0   :  { %vm55_vm0 = vcmask 1041408   ;;  %v2800_v2 = vmov 0.0   ;;  %vm42_vm1 = vcmask 31744   ;;  %vm2801_vm2 = vmmov 0   ;;  %s3291_s0 = inlined_call_operand.vmem [shape: f32[64,4], index: 0, kind: input, shape index: {}]   ;;  %s3292_s1 = inlined_call_operand.vmem [shape: bf16[41,128], index: 1, kind: input, shape index: {}]   ;;  %s3293_s2 = inlined_call_operand.vmem [shape: bf16[65,128], index: 2, kind: input, shape index: {}]   ;;  %s3294_s3 = inlined_call_operand.vmem [shape: f32[34,20], index: 3, kind: input, shape index: {}]   ;;  %s3295_s4 = inlined_call_operand.hbm [shape: f32[8,65], index: 4, kind: output, shape index: {}]  }
   0x1   :  { %v19_v0 = vld [vmem:[%s3292_s1] sm:$0x3]  ;;  %2355 = vmatprep.subr.bf16.mxu1 %v2800_v2  ;;  %v2847_v3 = vld [vmem:[%s3292_s1 + $0x4] sm:$0xff]   ;;  %v28_v6 = vld [vmem:[%s3291_s0 + $0x10] sm:$0xff]  ;;  %2359 = vmatprep.mubr.msk.bf16.mxu1 %vm2801_vm2, %v2800_v2 }
   0x2   :  { %2644 = vmatprep.subr.msk.bf16.mxu0 %vm55_vm0, %v19_v0  ;;  %v57_v1 = vsel %vm55_vm0, %v19_v0, 0  ;;  %v26_v4 = vld [vmem:[%s3291_s0] sm:$0xff]  ;;  %v27_v5 = vld [vmem:[%s3291_s0 + $0x8] sm:$0xff]  ;;  %v29_v7 = vld [vmem:[%s3291_s0 + $0x18] sm:$0xff]  ;;  %2356 = vmatpush3.bf16.msra.mxu1 %v2847_v3 }
   0x3   :  { %2346 = vmatpush3.bf16.msra.mxu0 %v57_v1  ;;  %v34_v8 = vpack.c.bf16 %v27_v5, %v26_v4  ;;  %v35_v9 = vpack.c.bf16 %v29_v7, %v28_v6  ;;  %v2865_v10 = vld [vmem:[%s3292_s1 + $0xc] sm:$0xff]   ;;  %2357 = vmatprep.subr.bf16.mxu1 %v2800_v2 }
   0x4   :  { %2371 = vmatprep.subr.bf16.mxu0 %v2800_v2 }
   0x5   :  { %2347 = vmatprep.mubr.msk.bf16.mxu0 %vm42_vm1, %v34_v8 }
   0x6   :  { %2348 = vmatmul.mubr.msk.bf16.vlgmr.msra.gmra.mrb[0].mxu0 %vm42_vm1, %v35_v9  ;;  %2358 = vmatpush3.bf16.msra.mxu1 %v2865_v10 }
   0x7   :  { %2372 = vmatpush3.bf16.msra.mxu0 %v2847_v3 }
   0x8   :  { %9 = vsyncpa [#allocation3], 0  ;;  %2363 = vmatprep.subr.bf16.mxu1 %v2800_v2  ;;  %2373 = vmatprep.subr.bf16.mxu0 %v2800_v2  ;;  %v2802_v11 = vmov 0   ;;  %v38_v12 = vlaneseq  ;;  %v24_v14 = vld [vmem:[%s3292_s1 + $0x14] sm:$0x1]  ;;  %s2803_s1 = smov 64  }
   0x9   :  { %2360 = vmatmul.mubr.bf16.vlgmr.msra.gmra.mrb[0].mxu1 %v2802_v11  ;;  %v25_v15 = vunpack.c.l.bf16 %v24_v14  ;;  %s2804_s5 = smov 32   ;;  %vm136_vm3 = vcmask 261120   ;;  %v30_v61 = vld [vmem:[%s3291_s0 + $0x20] sm:$0xff]  ;;  %v31_v62 = vld [vmem:[%s3291_s0 + $0x28] sm:$0xff]  ;;  %v32_v63 = vld [vmem:[%s3291_s0 + $0x30] sm:$0xff]  ;;  %s2805_s21 = smov 124  }
   0xa   :  { %2364 = vmatpush3.bf16.msra.mxu1 %v2847_v3  ;;  %2367 = vmatprep.mubr.msk.bf16.mxu1 %vm2801_vm2, %v2800_v2  ;;  %v2886_v13 = vshrl.u32 %v38_v12, 7  ;;  %v36_v0 = vpack.c.bf16 %v31_v62, %v30_v61  ;;  %v33_v1 = vld [vmem:[%s3291_s0 + $0x38] sm:$0xff]  ;;  %vm832_vm4 = vcmask 130048   ;;  %s2809_s10 = smov 44   ;;  %s2810_s11 = smov 48   ;;  %vm2143_vm5 = vcmask 293888  }
   0xb   :  { %2365 = vmatprep.subr.bf16.mxu1 %v2800_v2  ;;  %2374 = vmatpush3.bf16.msra.mxu0 %v2865_v10  ;;  %v37_v4 = vpack.c.bf16 %v33_v1, %v32_v63  ;;  %s2811_s12 = smov 52   ;;  %s2812_s13 = smov 56   ;;  %vm2145_vm6 = vcmask 326656   ;;  %vm2147_vm7 = vcmask 359424   ;;  %vm2149_vm8 = vcmask 392192  }
   0xc   :  { %2387 = vmatprep.subr.bf16.mxu0 %v2800_v2  ;;  %v40_v16 = vsub.s32 0, %v2886_v13  ;;  %2351 = vmatprep.mubr.msk.bf16.mxu0 %vm42_vm1, %v36_v0  ;;  %s2813_s0 = smov 60   ;;  %vm2151_vm9 = vcmask 424960   ;;  %vm2153_vm10 = vcmask 457728   ;;  %vm2155_vm11 = vcmask 490496  }
   0xd   :  { %vm2157_vm12 = vcmask 523264   ;;  %vm2159_vm13 = vcmask 531456  }
   0xe   :  { %2366 = vmatpush3.bf16.msra.mxu1 %v2865_v10  ;;  %v2894_v17 = vrot.slane %v25_v15, %v40_v16  ;;  %2352 = vmatmul.mubr.msk.bf16.gmra.mrb[4].mxu0 %vm42_vm1, %v37_v4 }
   0xf   :  { %2379 = vmatprep.subr.bf16.mxu1 %v2800_v2  ;;  %2375 = vmatprep.mubr.msk.bf16.mxu0 %vm2801_vm2, %v2800_v2 }
  0xd9   :  { %v2896_v18 = vpop.f32.mrb[0].mxu0 }
  0xda   :  { %v93_v19 = vpop.f32.mrb[1].mxu0 }
  0xdb   :  { %v94_v20 = vadd.f32 %v93_v19, %v2894_v17  ;;  %v2899_v21 = vpop.f32.mrb[2].mxu0 }
  0xdc   :  { %v96_v22 = vpop.f32.mrb[3].mxu0  ;;  %v174_v23 = vpop.f32.mrb[0].mxu1 }
  0xdd   :  { %v180_v24 = vadd.f32 %v174_v23, %v94_v20  ;;  %v2361_v25 = vpop.f32.mrb[1].mxu1  ;;  %v97_v44 = vadd.f32 %v96_v22, %v2894_v17  ;;  %v102_v20 = vadd.f32 %v2896_v18, %v2894_v17 }
  0xde   :  { %v177_v26 = vpop.f32.mrb[2].mxu1 }
  0xdf   :  { %v2181_v27 = vmul.f32 -1.442695, %v180_v24  ;;  %v2362_v28 = vpop.f32.mrb[3].mxu1 }
  0xe1   :  { %2676 = vpow2.f32 %v2181_v27  ;;  %v2933_v9 = vpop.f32.mrb[4].mxu0 }
  0xe2   :  { %v2935_v12 = vpop.f32.mrb[5].mxu0 }
  0xe3   :  { %v2937_v14 = vpop.f32.mrb[6].mxu0  ;;  %v110_v63 = vadd.f32 %v2935_v12, %v2894_v17 }
  0xe4   :  { %v2939_v15 = vpop.f32.mrb[7].mxu0 }
  0xeb   :  { %v2677_v29 = vpop.eup %2676 }
  0xec   :  { %v184_v30 = vadd.f32 1.0, %v2677_v29 }
  0xee   :  { %2678 = vrcp.f32 %v184_v30 }
  0xf8   :  { %v2679_v31 = vpop.eup %2678 }
  0xf9   :  { %v187_v32 = vmul.f32 2.0, %v2679_v31  ;;  %v189_v36 = vmul.f32 0.0, %v2679_v31 }
  0xfb   :  { %v2182_v33 = vadd.f32 -1.0, %v187_v32 }
  0xfd   :  { %191 = vrot.lane.b32.xlu0 %v2182_v33, %s2803_s1 }
 0x16f   :  { %v192_v34 = vpop.permute.xlu0 %191 }
 0x170   :  { %v194_v35 = vmul.f32 %v2679_v31, %v192_v34 }
 0x172   :  { %196 = vrot.lane.b32.xlu0 %v194_v35, %s2804_s5 }
 0x1e4   :  { %v197_v37 = vpop.permute.xlu0 %196 }
 0x1e5   :  { %v199_v38 = vadd.f32 %v197_v37, %v189_v36 }
 0x1e7   :  { %2680 = vtanh.f32 %v199_v38 }
 0x1f1   :  { %v2681_v39 = vpop.eup %2680 }
 0x1f2   :  { %202 = vrot.lane.b32.xlu1 %v2681_v39, %s2803_s1 }
 0x264   :  { %v203_v40 = vpop.permute.xlu1 %202 }
 0x265   :  { %v205_v41 = vmul.f32 %v2679_v31, %v203_v40 }
 0x267   :  { %v206_v42 = vpack.c.bf16 %v205_v41, %v205_v41 }
 0x269   :  { %208 = vrot.lane.b32.xlu1 %v206_v42, %s2804_s5  ;;  %v105_v42 = vadd.f32 %v2899_v21, %v2894_v17 }
 0x2db   :  { %v209_v43 = vpop.permute.xlu1 %208 }
 0x2dc   :  { %2368 = vmatmul.mubr.msk.bf16.vlgmr.msra.gmra.mrb[4].mxu1 %vm136_vm3, %v209_v43 }
 0x2dd   :  { %2380 = vmatpush3.bf16.msra.mxu1 %v2847_v3  ;;  %2383 = vmatprep.mubr.msk.bf16.mxu1 %vm2801_vm2, %v2800_v2 }
 0x2de   :  { %2381 = vmatprep.subr.bf16.mxu1 %v2800_v2 }
 0x2e1   :  { %2382 = vmatpush3.bf16.msra.mxu1 %v2865_v10 }
 0x2e2   :  { %2395 = vmatprep.subr.bf16.mxu1 %v2800_v2 }
 0x3af   :  { %v247_v45 = vpop.f32.mrb[4].mxu1 }
 0x3b0   :  { %v253_v46 = vadd.f32 %v247_v45, %v97_v44  ;;  %v2369_v47 = vpop.f32.mrb[5].mxu1 }
 0x3b1   :  { %v250_v48 = vpop.f32.mrb[6].mxu1 }
 0x3b2   :  { %v2184_v49 = vmul.f32 -1.442695, %v253_v46  ;;  %v2370_v50 = vpop.f32.mrb[7].mxu1 }
 0x3b4   :  { %2682 = vpow2.f32 %v2184_v49 }
 0x3be   :  { %v2683_v51 = vpop.eup %2682 }
 0x3bf   :  { %v257_v52 = vadd.f32 1.0, %v2683_v51 }
 0x3c1   :  { %2684 = vrcp.f32 %v257_v52 }
 0x3cb   :  { %v2685_v53 = vpop.eup %2684 }
 0x3cc   :  { %v260_v54 = vmul.f32 2.0, %v2685_v53  ;;  %v262_v58 = vmul.f32 %v2685_v53, %v199_v38 }
 0x3ce   :  { %v2185_v55 = vadd.f32 -1.0, %v260_v54 }
 0x3d0   :  { %264 = vrot.lane.b32.xlu0 %v2185_v55, %s2803_s1 }
 0x442   :  { %v265_v56 = vpop.permute.xlu0 %264 }
 0x443   :  { %v267_v57 = vmul.f32 %v2685_v53, %v265_v56 }
 0x445   :  { %269 = vrot.lane.b32.xlu1 %v267_v57, %s2804_s5 }
 0x4b7   :  { %v270_v59 = vpop.permute.xlu1 %269 }
 0x4b8   :  { %v272_v60 = vadd.f32 %v270_v59, %v262_v58 }
 0x4ba   :  { %2686 = vtanh.f32 %v272_v60 }
 0x4c4   :  { %v2687_v5 = vpop.eup %2686 }
 0x4c5   :  { %275 = vrot.lane.b32.xlu0 %v2687_v5, %s2803_s1 }
 0x537   :  { %v276_v6 = vpop.permute.xlu0 %275 }
 0x538   :  { %v278_v7 = vmul.f32 %v2685_v53, %v276_v6 }
 0x53a   :  { %v279_v8 = vpack.c.bf16 %v278_v7, %v278_v7 }
 0x53c   :  { %281 = vrot.lane.b32.xlu1 %v279_v8, %s2804_s5 }
 0x5ae   :  { %v282_v19 = vpop.permute.xlu1 %281 }
 0x5af   :  { %2376 = vmatmul.mubr.msk.bf16.vlgmr.msra.gmra.mrb[8].mxu0 %vm136_vm3, %v282_v19 }
 0x5b0   :  { %2388 = vmatpush3.bf16.msra.mxu0 %v2847_v3  ;;  %2391 = vmatprep.mubr.msk.bf16.mxu0 %vm2801_vm2, %v2800_v2 }
 0x5b1   :  { %2389 = vmatprep.subr.bf16.mxu0 %v2800_v2 }
 0x5b4   :  { %2390 = vmatpush3.bf16.msra.mxu0 %v2865_v10 }
 0x5b5   :  { %2403 = vmatprep.subr.bf16.mxu0 %v2800_v2 }
 0x682   :  { %v320_v22 = vpop.f32.mrb[8].mxu0 }
 0x683   :  { %v326_v23 = vadd.f32 %v320_v22, %v102_v20  ;;  %v2377_v24 = vpop.f32.mrb[9].mxu0 }
 0x684   :  { %v323_v25 = vpop.f32.mrb[10].mxu0 }
 0x685   :  { %v2187_v26 = vmul.f32 -1.442695, %v326_v23  ;;  %v2378_v27 = vpop.f32.mrb[11].mxu0 }
 0x687   :  { %2688 = vpow2.f32 %v2187_v26 }
 0x691   :  { %v2689_v28 = vpop.eup %2688 }
 0x692   :  { %v330_v29 = vadd.f32 1.0, %v2689_v28 }
 0x694   :  { %2690 = vrcp.f32 %v330_v29 }
 0x69e   :  { %v2691_v30 = vpop.eup %2690 }
 0x69f   :  { %v333_v31 = vmul.f32 2.0, %v2691_v30  ;;  %v335_v18 = vmul.f32 %v2691_v30, %v272_v60 }
 0x6a1   :  { %v2188_v32 = vadd.f32 -1.0, %v333_v31 }
 0x6a3   :  { %337 = vrot.lane.b32.xlu0 %v2188_v32, %s2803_s1 }
 0x715   :  { %v338_v33 = vpop.permute.xlu0 %337 }
 0x716   :  { %v340_v34 = vmul.f32 %v2691_v30, %v338_v33  ;;  %v113_v33 = vadd.f32 %v2939_v15, %v2894_v17 }
 0x718   :  { %342 = vrot.lane.b32.xlu1 %v340_v34, %s2804_s5 }
 0x78a   :  { %v343_v35 = vpop.permute.xlu1 %342 }
 0x78b   :  { %v345_v36 = vadd.f32 %v343_v35, %v335_v18 }
 0x78d   :  { %2692 = vtanh.f32 %v345_v36 }
 0x797   :  { %v2693_v37 = vpop.eup %2692 }
 0x798   :  { %348 = vrot.lane.b32.xlu0 %v2693_v37, %s2803_s1 }
 0x80a   :  { %v349_v38 = vpop.permute.xlu0 %348 }
 0x80b   :  { %v351_v39 = vmul.f32 %v2691_v30, %v349_v38 }
 0x80d   :  { %v352_v40 = vpack.c.bf16 %v351_v39, %v351_v39 }
 0x80f   :  { %354 = vrot.lane.b32.xlu1 %v352_v40, %s2804_s5 }
 0x881   :  { %v355_v41 = vpop.permute.xlu1 %354 }
 0x882   :  { %2384 = vmatmul.mubr.msk.bf16.vlgmr.msra.gmra.mrb[8].mxu1 %vm136_vm3, %v355_v41 }
 0x883   :  { %2396 = vmatpush3.bf16.msra.mxu1 %v2847_v3  ;;  %2399 = vmatprep.mubr.msk.bf16.mxu1 %vm2801_vm2, %v2800_v2 }
 0x884   :  { %2397 = vmatprep.subr.bf16.mxu1 %v2800_v2 }
 0x887   :  { %2398 = vmatpush3.bf16.msra.mxu1 %v2865_v10 }
 0x888   :  { %2411 = vmatprep.subr.bf16.mxu1 %v2800_v2 }
 0x955   :  { %v393_v43 = vpop.f32.mrb[8].mxu1 }
 0x956   :  { %v399_v44 = vadd.f32 %v393_v43, %v105_v42  ;;  %v2385_v45 = vpop.f32.mrb[9].mxu1 }
 0x957   :  { %v396_v46 = vpop.f32.mrb[10].mxu1 }
 0x958   :  { %v2190_v47 = vmul.f32 -1.442695, %v399_v44  ;;  %v2386_v48 = vpop.f32.mrb[11].mxu1 }
 0x95a   :  { %2694 = vpow2.f32 %v2190_v47 }
 0x964   :  { %v2695_v49 = vpop.eup %2694 }
 0x965   :  { %v403_v50 = vadd.f32 1.0, %v2695_v49 }
 0x967   :  { %2696 = vrcp.f32 %v403_v50 }
 0x971   :  { %v2697_v51 = vpop.eup %2696 }
 0x972   :  { %v406_v52 = vmul.f32 2.0, %v2697_v51  ;;  %v408_v21 = vmul.f32 %v2697_v51, %v345_v36 }
 0x974   :  { %v2191_v53 = vadd.f32 -1.0, %v406_v52 }
 0x976   :  { %410 = vrot.lane.b32.xlu0 %v2191_v53, %s2803_s1 }
 0x9e8   :  { %v411_v54 = vpop.permute.xlu0 %410 }
 0x9e9   :  { %v413_v55 = vmul.f32 %v2697_v51, %v411_v54 }
 0x9eb   :  { %415 = vrot.lane.b32.xlu1 %v413_v55, %s2804_s5 }
 0xa5d   :  { %v416_v56 = vpop.permute.xlu1 %415 }
 0xa5e   :  { %v418_v57 = vadd.f32 %v416_v56, %v408_v21 }
 0xa60   :  { %2698 = vtanh.f32 %v418_v57 }
 0xa6a   :  { %v2699_v58 = vpop.eup %2698 }
 0xa6b   :  { %421 = vrot.lane.b32.xlu0 %v2699_v58, %s2803_s1 }
 0xadd   :  { %v422_v59 = vpop.permute.xlu0 %421 }
 0xade   :  { %v424_v60 = vmul.f32 %v2697_v51, %v422_v59  ;;  %v118_v51 = vadd.f32 %v2933_v9, %v2894_v17 }
 0xae0   :  { %v425_v61 = vpack.c.bf16 %v424_v60, %v424_v60 }
 0xae2   :  { %427 = vrot.lane.b32.xlu1 %v425_v61, %s2804_s5 }
 0xb54   :  { %v428_v62 = vpop.permute.xlu1 %427 }
 0xb55   :  { %2392 = vmatmul.mubr.msk.bf16.vlgmr.msra.gmra.mrb[12].mxu0 %vm136_vm3, %v428_v62 }
 0xb56   :  { %2404 = vmatpush3.bf16.msra.mxu0 %v2847_v3  ;;  %2407 = vmatprep.mubr.msk.bf16.mxu0 %vm2801_vm2, %v2800_v2 }
 0xb57   :  { %2405 = vmatprep.subr.bf16.mxu0 %v2800_v2 }
 0xb5a   :  { %2406 = vmatpush3.bf16.msra.mxu0 %v2865_v10 }
 0xc28   :  { %v466_v0 = vpop.f32.mrb[12].mxu0 }
 0xc29   :  { %v472_v1 = vadd.f32 %v466_v0, %v110_v63  ;;  %v2393_v4 = vpop.f32.mrb[13].mxu0 }
 0xc2a   :  { %v469_v5 = vpop.f32.mrb[14].mxu0 }
 0xc2b   :  { %v2193_v6 = vmul.f32 -1.442695, %v472_v1  ;;  %v2394_v7 = vpop.f32.mrb[15].mxu0 }
 0xc2d   :  { %2700 = vpow2.f32 %v2193_v6 }
 0xc37   :  { %v2701_v8 = vpop.eup %2700 }
 0xc38   :  { %v476_v19 = vadd.f32 1.0, %v2701_v8 }
 0xc3a   :  { %2702 = vrcp.f32 %v476_v19  ;;  %v121_v19 = vadd.f32 %v2937_v14, %v2894_v17  ;;  %v717_v17 = vld [vmem:[%s3294_s3] sm:$0xff]  ;;  %v718_v14 = vld [vmem:[%s3294_s3 + $0x8] sm:$0xff] }
 0xc44   :  { %v2703_v20 = vpop.eup %2702 }
 0xc45   :  { %v479_v22 = vmul.f32 2.0, %v2703_v20  ;;  %v481_v12 = vmul.f32 %v2703_v20, %v418_v57 }
 0xc47   :  { %v2194_v23 = vadd.f32 -1.0, %v479_v22 }
 0xc49   :  { %483 = vrot.lane.b32.xlu0 %v2194_v23, %s2803_s1 }
 0xcbb   :  { %v484_v24 = vpop.permute.xlu0 %483 }
 0xcbc   :  { %v486_v25 = vmul.f32 %v2703_v20, %v484_v24 }
 0xcbe   :  { %488 = vrot.lane.b32.xlu1 %v486_v25, %s2804_s5 }
 0xd30   :  { %v489_v26 = vpop.permute.xlu1 %488 }
 0xd31   :  { %v491_v27 = vadd.f32 %v489_v26, %v481_v12 }
 0xd33   :  { %2704 = vtanh.f32 %v491_v27 }
 0xd3d   :  { %v2705_v28 = vpop.eup %2704 }
 0xd3e   :  { %494 = vrot.lane.b32.xlu0 %v2705_v28, %s2803_s1 }
 0xdb0   :  { %v495_v29 = vpop.permute.xlu0 %494 }
 0xdb1   :  { %v497_v30 = vmul.f32 %v2703_v20, %v495_v29 }
 0xdb3   :  { %v498_v31 = vpack.c.bf16 %v497_v30, %v497_v30 }
 0xdb5   :  { %500 = vrot.lane.b32.xlu1 %v498_v31, %s2804_s5 }
 0xe27   :  { %v501_v32 = vpop.permute.xlu1 %500 }
 0xe28   :  { %2400 = vmatmul.mubr.msk.bf16.vlgmr.msra.gmra.mrb[12].mxu1 %vm136_vm3, %v501_v32 }
 0xe29   :  { %2412 = vmatpush3.bf16.msra.mxu1 %v2847_v3  ;;  %2415 = vmatprep.mubr.msk.bf16.mxu1 %vm2801_vm2, %v2800_v2 }
 0xe2a   :  { %2413 = vmatprep.subr.bf16.mxu1 %v2800_v2 }
 0xe2d   :  { %2414 = vmatpush3.bf16.msra.mxu1 %v2865_v10 }
 0xe2e   :  { %2430 = vmatprep.subr.bf16.mxu1 %v2800_v2 }
 0xefb   :  { %v539_v34 = vpop.f32.mrb[12].mxu1 }
 0xefc   :  { %v545_v18 = vadd.f32 %v539_v34, %v113_v33  ;;  %v2401_v35 = vpop.f32.mrb[13].mxu1  ;;  %v2660_v33 = vpack.i.bf16 %v718_v14, %v717_v17  ;;  %v3014_v34 = vpack.c.bf16 %v718_v14, %v717_v17 }
 0xefd   :  { %v542_v36 = vpop.f32.mrb[14].mxu1  ;;  %v720_v35 = vld [vmem:[%s3294_s3 + $0x18] sm:$0xff] }
 0xefe   :  { %v2196_v37 = vmul.f32 -1.442695, %v545_v18  ;;  %v2402_v38 = vpop.f32.mrb[15].mxu1  ;;  %v719_v18 = vld [vmem:[%s3294_s3 + $0x10] sm:$0xff] }
 0xeff   :  { %v3022_v36 = vpack.c.bf16 %v720_v35, %v719_v18 }
 0xf00   :  { %2706 = vpow2.f32 %v2196_v37 }
 0xf0a   :  { %v2707_v3 = vpop.eup %2706 }
 0xf0b   :  { %v549_v39 = vadd.f32 1.0, %v2707_v3 }
 0xf0d   :  { %2708 = vrcp.f32 %v549_v39 }
 0xf17   :  { %v2709_v40 = vpop.eup %2708 }
 0xf18   :  { %v552_v41 = vmul.f32 2.0, %v2709_v40  ;;  %v554_v15 = vmul.f32 %v2709_v40, %v491_v27 }
 0xf1a   :  { %v2197_v42 = vadd.f32 -1.0, %v552_v41 }
 0xf1c   :  { %556 = vrot.lane.b32.xlu0 %v2197_v42, %s2803_s1  ;;  %v2806_v42 = vmov 0.0|0.0  }
 0xf1d   :  { %2590 = vmatprep.subr.bf16.mxu0 %v2806_v42 }
 0xf8e   :  { %v557_v10 = vpop.permute.xlu0 %556 }
 0xf8f   :  { %v559_v43 = vmul.f32 %v2709_v40, %v557_v10  ;;  %v2672_v10 = vld [vmem:[%s3293_s2] sm:$0xff]  }
 0xf91   :  { %561 = vrot.lane.b32.xlu1 %v559_v43, %s2804_s5 }
0x1003   :  { %v562_v44 = vpop.permute.xlu1 %561 }
0x1004   :  { %v564_v45 = vadd.f32 %v562_v44, %v554_v15  ;;  %v2673_v15 = vld [vmem:[%s3293_s2 + $0x8] sm:$0xff]  }
0x1006   :  { %2710 = vtanh.f32 %v564_v45 }
0x1010   :  { %v2711_v46 = vpop.eup %2710 }
0x1011   :  { %567 = vrot.lane.b32.xlu0 %v2711_v46, %s2803_s1 }
0x1083   :  { %v568_v47 = vpop.permute.xlu0 %567 }
0x1084   :  { %v570_v48 = vmul.f32 %v2709_v40, %v568_v47 }
0x1086   :  { %v571_v49 = vpack.c.bf16 %v570_v48, %v570_v48 }
0x1088   :  { %573 = vrot.lane.b32.xlu1 %v571_v49, %s2804_s5 }
0x10fa   :  { %v574_v50 = vpop.permute.xlu1 %573 }
0x10fb   :  { %2408 = vmatmul.mubr.msk.bf16.vlgmr.msra.gmra.mrb[16].mxu0 %vm136_vm3, %v574_v50 }
0x10fc   :  { %2427 = vmatprep.mubr.msk.f32.mxu0 %vm2801_vm2, %v2800_v2 }
0x11ce   :  { %v612_v52 = vpop.f32.mrb[16].mxu0 }
0x11cf   :  { %v618_v53 = vadd.f32 %v612_v52, %v118_v51  ;;  %v2409_v54 = vpop.f32.mrb[17].mxu0 }
0x11d0   :  { %v615_v55 = vpop.f32.mrb[18].mxu0 }
0x11d1   :  { %v2199_v21 = vmul.f32 -1.442695, %v618_v53  ;;  %v2410_v56 = vpop.f32.mrb[19].mxu0  ;;  %v3043_v53 = vld [vmem:[%s3293_s2 + $0x10] sm:$0xff]  }
0x11d2   :  { %v851_v56 = vld [vmem:[%s3293_s2 + $0x20] sm:$0x1] }
0x11d3   :  { %2712 = vpow2.f32 %v2199_v21  ;;  %v3053_v21 = vld [vmem:[%s3293_s2 + $0x18] sm:$0xff]  }
0x11dd   :  { %v2713_v57 = vpop.eup %2712 }
0x11de   :  { %v622_v58 = vadd.f32 1.0, %v2713_v57  ;;  %v852_v57 = vunpack.c.l.bf16 %v851_v56 }
0x11e0   :  { %2714 = vrcp.f32 %v622_v58 }
0x11ea   :  { %v2715_v59 = vpop.eup %2714 }
0x11eb   :  { %v625_v60 = vmul.f32 2.0, %v2715_v59  ;;  %v627_v9 = vmul.f32 %v2715_v59, %v564_v45  ;;  %v2665_v45 = vpack.i.bf16 %v720_v35, %v719_v18 }
0x11ed   :  { %v2200_v61 = vadd.f32 -1.0, %v625_v60  ;;  %v857_v60 = vrot.slane %v852_v57, %v40_v16 }
0x11ef   :  { %629 = vrot.lane.b32.xlu0 %v2200_v61, %s2803_s1 }
0x1261   :  { %v630_v62 = vpop.permute.xlu0 %629 }
0x1262   :  { %v632_v63 = vmul.f32 %v2715_v59, %v630_v62 }
0x1264   :  { %634 = vrot.lane.b32.xlu1 %v632_v63, %s2804_s5 }
0x12d6   :  { %v635_v0 = vpop.permute.xlu1 %634 }
0x12d7   :  { %v637_v1 = vadd.f32 %v635_v0, %v627_v9 }
0x12d9   :  { %2716 = vtanh.f32 %v637_v1 }
0x12e3   :  { %v2717_v4 = vpop.eup %2716 }
0x12e4   :  { %640 = vrot.lane.b32.xlu0 %v2717_v4, %s2803_s1 }
0x1356   :  { %v641_v5 = vpop.permute.xlu0 %640 }
0x1357   :  { %v643_v6 = vmul.f32 %v2715_v59, %v641_v5 }
0x1359   :  { %v644_v7 = vpack.c.bf16 %v643_v6, %v643_v6 }
0x135b   :  { %646 = vrot.lane.b32.xlu1 %v644_v7, %s2804_s5 }
0x13cd   :  { %v647_v8 = vpop.permute.xlu1 %646 }
0x13ce   :  { %2416 = vmatmul.mubr.msk.bf16.vlgmr.msra.gmra.mrb[16].mxu1 %vm136_vm3, %v647_v8 }
0x13cf   :  { %2434 = vmatprep.mubr.msk.bf16.mxu1 %vm2801_vm2, %v2800_v2  ;;  %2431 = vmatpush3.bf16.msra.mxu1 %v2672_v10 }
0x13d0   :  { %2432 = vmatprep.subr.bf16.mxu1 %v2800_v2 }
0x13d3   :  { %2433 = vmatpush3.bf16.msra.mxu1 %v2673_v15 }
0x13d4   :  { %2596 = vmatprep.subr.bf16.mxu1 %v2806_v42 }
0x14a1   :  { %v685_v20 = vpop.f32.mrb[16].mxu1 }
0x14a2   :  { %v691_v22 = vadd.f32 %v685_v20, %v121_v19  ;;  %v2417_v23 = vpop.f32.mrb[17].mxu1 }
0x14a3   :  { %v688_v24 = vpop.f32.mrb[18].mxu1 }
0x14a4   :  { %v2202_v25 = vmul.f32 -1.442695, %v691_v22  ;;  %v2418_v12 = vpop.f32.mrb[19].mxu1 }
0x14a6   :  { %2718 = vpow2.f32 %v2202_v25 }
0x14b0   :  { %v2719_v26 = vpop.eup %2718 }
0x14b1   :  { %v695_v27 = vadd.f32 1.0, %v2719_v26 }
0x14b3   :  { %2720 = vrcp.f32 %v695_v27 }
0x14bd   :  { %v2721_v28 = vpop.eup %2720 }
0x14be   :  { %v698_v29 = vmul.f32 2.0, %v2721_v28  ;;  %v700_v37 = vmul.f32 %v2721_v28, %v637_v1 }
0x14c0   :  { %v2203_v30 = vadd.f32 -1.0, %v698_v29 }
0x14c2   :  { %702 = vrot.lane.b32.xlu0 %v2203_v30, %s2803_s1 }
0x1534   :  { %v703_v31 = vpop.permute.xlu0 %702 }
0x1535   :  { %v705_v32 = vmul.f32 %v2721_v28, %v703_v31 }
0x1537   :  { %707 = vrot.lane.b32.xlu1 %v705_v32, %s2804_s5 }
0x153b   :  { %2661 = vrot.lane.b32.xlu1 %v2660_v33, %s2805_s21 }
0x15a9   :  { %v708_v38 = vpop.permute.xlu1 %707 }
0x15aa   :  { %v710_v3 = vadd.f32 %v708_v38, %v700_v37 }
0x15ac   :  { %2722 = vtanh.f32 %v710_v3 }
0x15ad   :  { %v2662_v39 = vpop.permute.xlu1 %2661 }
0x15ae   :  { %v2664_v40 = vunpack.i.h.bf16 %v2662_v39  ;;  %v2663_v41 = vunpack.i.l.bf16 %v2662_v39 }
0x15b0   :  { %v2591_v43 = vpack.c.bf16 %v2664_v40, %v2663_v41 }
0x15b2   :  { %2592 = vmatpush3.bf16.msra.mxu0 %v2591_v43 }
0x15b3   :  { %2593 = vmatprep.subr.bf16.mxu0 %v2806_v42 }
0x15b6   :  { %v2723_v44 = vpop.eup %2722 }
0x15b7   :  { %713 = vrot.lane.b32.xlu0 %v2723_v44, %s2803_s1 }
0x15bb   :  { %2666 = vrot.lane.b32.xlu0 %v2665_v45, %s2805_s21 }
0x1629   :  { %v714_v46 = vpop.permute.xlu0 %713 }
0x162a   :  { %v716_v47 = vmul.f32 %v2721_v28, %v714_v46 }
0x162c   :  { %v853_v48 = vpack.c.bf16 %v716_v47, %v716_v47  ;;  %728 = vrot.lane.b32.xlu1 %v716_v47, %s2804_s5 }
0x162d   :  { %v2667_v49 = vpop.permute.xlu0 %2666 }
0x162e   :  { %859 = vrot.lane.b32.xlu0 %v853_v48, %s2804_s5  ;;  %v2669_v50 = vunpack.i.h.bf16 %v2667_v49  ;;  %v2668_v51 = vunpack.i.l.bf16 %v2667_v49 }
0x1630   :  { %v2594_v52 = vpack.c.bf16 %v2669_v50, %v2668_v51 }
0x1632   :  { %2595 = vmatpush3.bf16.msra.mxu0 %v2594_v52 }
0x1633   :  { %2438 = vmatprep.subr.bf16.mxu0 %v2800_v2 }
0x169e   :  { %v3045_v54 = vpop.permute.xlu1 %728 }
0x169f   :  { %2428 = vmatmul.mubr.msk.f32.vlgmr.msra.gmra.mrb[20].mxu0 %vm136_vm3, %v3045_v54 }
0x16a0   :  { %2439 = vmatpush3.bf16.msra.mxu0 %v3043_v53  ;;  %v860_v55 = vpop.permute.xlu0 %859  ;;  %2442 = vmatprep.mubr.msk.bf16.mxu0 %vm2801_vm2, %v2800_v2 }
0x16a1   :  { %2435 = vmatmul.mubr.msk.bf16.vlgmr.msra.gmra.mrb[20].mxu1 %vm136_vm3, %v860_v55  ;;  %2440 = vmatprep.subr.bf16.mxu0 %v2800_v2 }
0x16a2   :  { %2598 = vmatpush3.bf16.msra.mxu1 %v3014_v34  ;;  %2454 = vmatprep.mubr.msk.f32.mxu1 %vm2801_vm2, %v2800_v2 }
0x16a3   :  { %2599 = vmatprep.subr.bf16.mxu1 %v2806_v42 }
0x16a4   :  { %2441 = vmatpush3.bf16.msra.mxu0 %v3053_v21 }
0x16a5   :  { %2457 = vmatprep.subr.bf16.mxu0 %v2800_v2 }
0x16a6   :  { %2601 = vmatpush3.bf16.msra.mxu1 %v3022_v36 }
0x16a7   :  { %2443 = vmatmul.mubr.bf16.vlgmr.msra.gmra.mrb[24].mxu0 %v2802_v11  ;;  %2602 = vmatprep.subr.bf16.mxu1 %v2806_v42 }
0x16a8   :  { %2458 = vmatpush3.bf16.msra.mxu0 %v3043_v53  ;;  %2461 = vmatprep.mubr.msk.bf16.mxu0 %vm2801_vm2, %v2800_v2 }
0x16a9   :  { %2459 = vmatprep.subr.bf16.mxu0 %v2800_v2 }
0x16ac   :  { %2460 = vmatpush3.bf16.msra.mxu0 %v3053_v21 }
0x16ad   :  { %2476 = vmatprep.subr.bf16.mxu0 %v2800_v2 }
0x1772   :  { %v3077_v58 = vpop.f32.mrb[20].mxu0 }
0x1773   :  { %v2429_v11 = vpop.f32.mrb[21].mxu0 }
0x1774   :  { %v910_v59 = vpop.f32.mrb[20].mxu1 }
0x1775   :  { %v2436_v61 = vpop.f32.mrb[21].mxu1  ;;  %v3081_v9 = vadd.f32 %v910_v59, %v857_v60 }
0x1776   :  { %v913_v62 = vpop.f32.mrb[22].mxu1 }
0x1777   :  { %v2437_v63 = vpop.f32.mrb[23].mxu1 }
0x177a   :  { %v962_v0 = vpop.f32.mrb[24].mxu0 }
0x177b   :  { %v968_v1 = vadd.f32 %v962_v0, %v3081_v9  ;;  %v2444_v4 = vpop.f32.mrb[25].mxu0 }
0x177c   :  { %v965_v5 = vpop.f32.mrb[26].mxu0 }
0x177d   :  { %v2213_v6 = vmul.f32 -1.442695, %v968_v1  ;;  %v2445_v7 = vpop.f32.mrb[27].mxu0 }
0x177f   :  { %2724 = vpow2.f32 %v2213_v6 }
0x1789   :  { %v2725_v8 = vpop.eup %2724 }
0x178a   :  { %v972_v19 = vadd.f32 1.0, %v2725_v8 }
0x178c   :  { %2726 = vrcp.f32 %v972_v19 }
0x1796   :  { %v2727_v20 = vpop.eup %2726 }
0x1797   :  { %v975_v22 = vmul.f32 2.0, %v2727_v20  ;;  %v977_v24 = vmul.f32 0.0, %v2727_v20 }
0x1799   :  { %v2214_v13 = vadd.f32 -1.0, %v975_v22 }
0x179b   :  { %979 = vrot.lane.b32.xlu1 %v2214_v13, %s2803_s1 }
0x180d   :  { %v980_v16 = vpop.permute.xlu1 %979 }
0x180e   :  { %v982_v23 = vmul.f32 %v2727_v20, %v980_v16 }
0x1810   :  { %984 = vrot.lane.b32.xlu0 %v982_v23, %s2804_s5 }
0x1882   :  { %v985_v25 = vpop.permute.xlu0 %984 }
0x1883   :  { %v987_v12 = vadd.f32 %v985_v25, %v977_v24 }
0x1885   :  { %2728 = vtanh.f32 %v987_v12 }
0x188f   :  { %v2729_v26 = vpop.eup %2728 }
0x1890   :  { %990 = vrot.lane.b32.xlu1 %v2729_v26, %s2803_s1 }
0x1902   :  { %v991_v27 = vpop.permute.xlu1 %990 }
0x1903   :  { %v3087_v28 = vmul.f32 %v2727_v20, %v991_v27 }
0x1905   :  { %v1069_v29 = vpack.c.bf16 %v3087_v28, %v3087_v28 }
0x1907   :  { %1071 = vrot.lane.b32.xlu0 %v1069_v29, %s2804_s5 }
0x1979   :  { %v1072_v30 = vpop.permute.xlu0 %1071 }
0x197a   :  { %2462 = vmatmul.mubr.msk.bf16.vlgmr.msra.gmra.mrb[28].mxu0 %vm136_vm3, %v1072_v30 }
0x197b   :  { %2477 = vmatpush3.bf16.msra.mxu0 %v3043_v53  ;;  %2480 = vmatprep.mubr.msk.bf16.mxu0 %vm2801_vm2, %v2800_v2 }
0x197c   :  { %2478 = vmatprep.subr.bf16.mxu0 %v2800_v2 }
0x197f   :  { %2479 = vmatpush3.bf16.msra.mxu0 %v3053_v21 }
0x1980   :  { %2495 = vmatprep.subr.bf16.mxu0 %v2800_v2 }
0x1a4d   :  { %v1110_v31 = vpop.f32.mrb[28].mxu0 }
0x1a4e   :  { %v1116_v32 = vadd.f32 %v1110_v31, %v3081_v9  ;;  %v2463_v17 = vpop.f32.mrb[29].mxu0 }
0x1a4f   :  { %v1113_v14 = vpop.f32.mrb[30].mxu0 }
0x1a50   :  { %v2217_v33 = vmul.f32 -1.442695, %v1116_v32  ;;  %v2464_v18 = vpop.f32.mrb[31].mxu0 }
0x1a52   :  { %2730 = vpow2.f32 %v2217_v33 }
0x1a5c   :  { %v2731_v35 = vpop.eup %2730 }
0x1a5d   :  { %v1120_v37 = vadd.f32 1.0, %v2731_v35 }
0x1a5f   :  { %2732 = vrcp.f32 %v1120_v37 }
0x1a69   :  { %v2733_v38 = vpop.eup %2732 }
0x1a6a   :  { %v1123_v3 = vmul.f32 2.0, %v2733_v38  ;;  %v1125_v10 = vmul.f32 %v2733_v38, %v987_v12 }
0x1a6c   :  { %v2218_v39 = vadd.f32 -1.0, %v1123_v3 }
0x1a6e   :  { %1127 = vrot.lane.b32.xlu1 %v2218_v39, %s2803_s1 }
0x1ae0   :  { %v1128_v40 = vpop.permute.xlu1 %1127 }
0x1ae1   :  { %v1130_v41 = vmul.f32 %v2733_v38, %v1128_v40 }
0x1ae3   :  { %1132 = vrot.lane.b32.xlu0 %v1130_v41, %s2804_s5 }
0x1b55   :  { %v1133_v43 = vpop.permute.xlu0 %1132 }
0x1b56   :  { %v1135_v15 = vadd.f32 %v1133_v43, %v1125_v10 }
0x1b58   :  { %2734 = vtanh.f32 %v1135_v15 }
0x1b62   :  { %v2735_v44 = vpop.eup %2734 }
0x1b63   :  { %1138 = vrot.lane.b32.xlu1 %v2735_v44, %s2803_s1 }
0x1bd5   :  { %v1139_v45 = vpop.permute.xlu1 %1138 }
0x1bd6   :  { %v3103_v46 = vmul.f32 %v2733_v38, %v1139_v45 }
0x1bd8   :  { %v1217_v47 = vpack.c.bf16 %v3103_v46, %v3103_v46 }
0x1bda   :  { %1219 = vrot.lane.b32.xlu0 %v1217_v47, %s2804_s5 }
0x1c4c   :  { %v1220_v48 = vpop.permute.xlu0 %1219 }
0x1c4d   :  { %2481 = vmatmul.mubr.msk.bf16.vlgmr.msra.gmra.mrb[32].mxu0 %vm136_vm3, %v1220_v48 }
0x1c4e   :  { %2496 = vmatpush3.bf16.msra.mxu0 %v3043_v53  ;;  %2499 = vmatprep.mubr.msk.bf16.mxu0 %vm2801_vm2, %v2800_v2 }
0x1c4f   :  { %2497 = vmatprep.subr.bf16.mxu0 %v2800_v2 }
0x1c52   :  { %2498 = vmatpush3.bf16.msra.mxu0 %v3053_v21 }
0x1c53   :  { %2514 = vmatprep.subr.bf16.mxu0 %v2800_v2 }
0x1d20   :  { %v1258_v49 = vpop.f32.mrb[32].mxu0 }
0x1d21   :  { %v1264_v50 = vadd.f32 %v1258_v49, %v3081_v9  ;;  %v2482_v51 = vpop.f32.mrb[33].mxu0 }
0x1d22   :  { %v1261_v52 = vpop.f32.mrb[34].mxu0 }
0x1d23   :  { %v2221_v55 = vmul.f32 -1.442695, %v1264_v50  ;;  %v2483_v56 = vpop.f32.mrb[35].mxu0 }
0x1d25   :  { %2736 = vpow2.f32 %v2221_v55 }
0x1d2f   :  { %v2737_v57 = vpop.eup %2736 }
0x1d30   :  { %v1268_v11 = vadd.f32 1.0, %v2737_v57 }
0x1d32   :  { %2738 = vrcp.f32 %v1268_v11 }
0x1d3c   :  { %v2739_v59 = vpop.eup %2738 }
0x1d3d   :  { %v1271_v60 = vmul.f32 2.0, %v2739_v59  ;;  %v1273_v0 = vmul.f32 %v2739_v59, %v1135_v15 }
0x1d3f   :  { %v2222_v61 = vadd.f32 -1.0, %v1271_v60 }
0x1d41   :  { %1275 = vrot.lane.b32.xlu1 %v2222_v61, %s2803_s1 }
0x1db3   :  { %v1276_v62 = vpop.permute.xlu1 %1275 }
0x1db4   :  { %v1278_v63 = vmul.f32 %v2739_v59, %v1276_v62 }
0x1db6   :  { %1280 = vrot.lane.b32.xlu0 %v1278_v63, %s2804_s5 }
0x1e28   :  { %v1281_v1 = vpop.permute.xlu0 %1280 }
0x1e29   :  { %v1283_v4 = vadd.f32 %v1281_v1, %v1273_v0 }
0x1e2b   :  { %2740 = vtanh.f32 %v1283_v4 }
0x1e35   :  { %v2741_v5 = vpop.eup %2740 }
0x1e36   :  { %1286 = vrot.lane.b32.xlu1 %v2741_v5, %s2803_s1 }
0x1ea8   :  { %v1287_v6 = vpop.permute.xlu1 %1286 }
0x1ea9   :  { %v3119_v7 = vmul.f32 %v2739_v59, %v1287_v6 }
0x1eab   :  { %v1365_v8 = vpack.c.bf16 %v3119_v7, %v3119_v7 }
0x1ead   :  { %1367 = vrot.lane.b32.xlu0 %v1365_v8, %s2804_s5 }
0x1f1f   :  { %v1368_v19 = vpop.permute.xlu0 %1367 }
0x1f20   :  { %2500 = vmatmul.mubr.msk.bf16.vlgmr.msra.gmra.mrb[36].mxu0 %vm136_vm3, %v1368_v19 }
0x1f21   :  { %2515 = vmatpush3.bf16.msra.mxu0 %v3043_v53  ;;  %2518 = vmatprep.mubr.msk.bf16.mxu0 %vm2801_vm2, %v2800_v2 }
0x1f22   :  { %2516 = vmatprep.subr.bf16.mxu0 %v2800_v2 }
0x1f25   :  { %2517 = vmatpush3.bf16.msra.mxu0 %v3053_v21 }
0x1f26   :  { %2533 = vmatprep.subr.bf16.mxu0 %v2800_v2 }
0x1ff3   :  { %v1406_v20 = vpop.f32.mrb[36].mxu0 }
0x1ff4   :  { %v1412_v22 = vadd.f32 %v1406_v20, %v3081_v9  ;;  %v2501_v13 = vpop.f32.mrb[37].mxu0 }
0x1ff5   :  { %v1409_v16 = vpop.f32.mrb[38].mxu0 }
0x1ff6   :  { %v2225_v23 = vmul.f32 -1.442695, %v1412_v22  ;;  %v2502_v24 = vpop.f32.mrb[39].mxu0 }
0x1ff8   :  { %2742 = vpow2.f32 %v2225_v23 }
0x2002   :  { %v2743_v25 = vpop.eup %2742 }
0x2003   :  { %v1416_v12 = vadd.f32 1.0, %v2743_v25 }
0x2005   :  { %2744 = vrcp.f32 %v1416_v12 }
0x200f   :  { %v2745_v26 = vpop.eup %2744 }
0x2010   :  { %v1419_v27 = vmul.f32 2.0, %v2745_v26  ;;  %v1421_v32 = vmul.f32 %v2745_v26, %v1283_v4 }
0x2012   :  { %v2226_v29 = vadd.f32 -1.0, %v1419_v27 }
0x2014   :  { %1423 = vrot.lane.b32.xlu1 %v2226_v29, %s2803_s1 }
0x2086   :  { %v1424_v30 = vpop.permute.xlu1 %1423 }
0x2087   :  { %v1426_v31 = vmul.f32 %v2745_v26, %v1424_v30 }
0x2089   :  { %1428 = vrot.lane.b32.xlu0 %v1426_v31, %s2804_s5 }
0x20fb   :  { %v1429_v17 = vpop.permute.xlu0 %1428 }
0x20fc   :  { %v1431_v14 = vadd.f32 %v1429_v17, %v1421_v32 }
0x20fe   :  { %2746 = vtanh.f32 %v1431_v14 }
0x2108   :  { %v2747_v33 = vpop.eup %2746 }
0x2109   :  { %1434 = vrot.lane.b32.xlu1 %v2747_v33, %s2803_s1 }
0x217b   :  { %v1435_v18 = vpop.permute.xlu1 %1434 }
0x217c   :  { %v3135_v35 = vmul.f32 %v2745_v26, %v1435_v18 }
0x217e   :  { %v1513_v37 = vpack.c.bf16 %v3135_v35, %v3135_v35 }
0x2180   :  { %1515 = vrot.lane.b32.xlu0 %v1513_v37, %s2804_s5 }
0x21f2   :  { %v1516_v38 = vpop.permute.xlu0 %1515 }
0x21f3   :  { %2519 = vmatmul.mubr.msk.bf16.vlgmr.msra.gmra.mrb[40].mxu0 %vm136_vm3, %v1516_v38 }
0x21f4   :  { %2534 = vmatpush3.bf16.msra.mxu0 %v3043_v53  ;;  %2537 = vmatprep.mubr.msk.bf16.mxu0 %vm2801_vm2, %v2800_v2 }
0x21f5   :  { %2535 = vmatprep.subr.bf16.mxu0 %v2800_v2 }
0x21f8   :  { %2536 = vmatpush3.bf16.msra.mxu0 %v3053_v21 }
0x21f9   :  { %2552 = vmatprep.subr.bf16.mxu0 %v2800_v2 }
0x22c6   :  { %v1554_v3 = vpop.f32.mrb[40].mxu0 }
0x22c7   :  { %v1560_v39 = vadd.f32 %v1554_v3, %v3081_v9  ;;  %v2520_v40 = vpop.f32.mrb[41].mxu0 }
0x22c8   :  { %v1557_v41 = vpop.f32.mrb[42].mxu0 }
0x22c9   :  { %v2229_v10 = vmul.f32 -1.442695, %v1560_v39  ;;  %v2521_v43 = vpop.f32.mrb[43].mxu0 }
0x22cb   :  { %2748 = vpow2.f32 %v2229_v10 }
0x22d5   :  { %v2749_v15 = vpop.eup %2748 }
0x22d6   :  { %v1564_v44 = vadd.f32 1.0, %v2749_v15 }
0x22d8   :  { %2750 = vrcp.f32 %v1564_v44 }
0x22e2   :  { %v2751_v45 = vpop.eup %2750 }
0x22e3   :  { %v1567_v47 = vmul.f32 2.0, %v2751_v45  ;;  %v1569_v51 = vmul.f32 %v2751_v45, %v1431_v14 }
0x22e5   :  { %v2230_v48 = vadd.f32 -1.0, %v1567_v47 }
0x22e7   :  { %1571 = vrot.lane.b32.xlu1 %v2230_v48, %s2803_s1 }
0x2359   :  { %v1572_v49 = vpop.permute.xlu1 %1571 }
0x235a   :  { %v1574_v50 = vmul.f32 %v2751_v45, %v1572_v49 }
0x235c   :  { %1576 = vrot.lane.b32.xlu0 %v1574_v50, %s2804_s5 }
0x23ce   :  { %v1577_v52 = vpop.permute.xlu0 %1576 }
0x23cf   :  { %v1579_v55 = vadd.f32 %v1577_v52, %v1569_v51 }
0x23d1   :  { %2752 = vtanh.f32 %v1579_v55 }
0x23db   :  { %v2753_v56 = vpop.eup %2752 }
0x23dc   :  { %1582 = vrot.lane.b32.xlu1 %v2753_v56, %s2803_s1 }
0x244e   :  { %v1583_v57 = vpop.permute.xlu1 %1582 }
0x244f   :  { %v3151_v11 = vmul.f32 %v2751_v45, %v1583_v57 }
0x2451   :  { %v1661_v59 = vpack.c.bf16 %v3151_v11, %v3151_v11 }
0x2453   :  { %1663 = vrot.lane.b32.xlu0 %v1661_v59, %s2804_s5 }
0x24c5   :  { %v1664_v60 = vpop.permute.xlu0 %1663 }
0x24c6   :  { %2538 = vmatmul.mubr.msk.bf16.vlgmr.msra.gmra.mrb[44].mxu0 %vm136_vm3, %v1664_v60 }
0x24c7   :  { %2553 = vmatpush3.bf16.msra.mxu0 %v3043_v53  ;;  %2556 = vmatprep.mubr.msk.bf16.mxu0 %vm2801_vm2, %v2800_v2 }
0x24c8   :  { %2554 = vmatprep.subr.bf16.mxu0 %v2800_v2 }
0x24cb   :  { %2555 = vmatpush3.bf16.msra.mxu0 %v3053_v21 }
0x24cc   :  { %2571 = vmatprep.subr.bf16.mxu0 %v2800_v2 }
0x2599   :  { %v1702_v61 = vpop.f32.mrb[44].mxu0 }
0x259a   :  { %v1708_v62 = vadd.f32 %v1702_v61, %v3081_v9  ;;  %v2539_v63 = vpop.f32.mrb[45].mxu0 }
0x259b   :  { %v1705_v0 = vpop.f32.mrb[46].mxu0 }
0x259c   :  { %v2233_v1 = vmul.f32 -1.442695, %v1708_v62  ;;  %v2540_v4 = vpop.f32.mrb[47].mxu0 }
0x259e   :  { %2754 = vpow2.f32 %v2233_v1 }
0x25a8   :  { %v2755_v5 = vpop.eup %2754 }
0x25a9   :  { %v1712_v6 = vadd.f32 1.0, %v2755_v5 }
0x25ab   :  { %2756 = vrcp.f32 %v1712_v6 }
0x25b5   :  { %v2757_v8 = vpop.eup %2756 }
0x25b6   :  { %v1715_v19 = vmul.f32 2.0, %v2757_v8  ;;  %v1717_v16 = vmul.f32 %v2757_v8, %v1579_v55 }
0x25b8   :  { %v2234_v20 = vadd.f32 -1.0, %v1715_v19 }
0x25ba   :  { %1719 = vrot.lane.b32.xlu1 %v2234_v20, %s2803_s1 }
0x262c   :  { %v1720_v22 = vpop.permute.xlu1 %1719 }
0x262d   :  { %v1722_v13 = vmul.f32 %v2757_v8, %v1720_v22 }
0x262f   :  { %1724 = vrot.lane.b32.xlu0 %v1722_v13, %s2804_s5 }
0x26a1   :  { %v1725_v23 = vpop.permute.xlu0 %1724 }
0x26a2   :  { %v1727_v24 = vadd.f32 %v1725_v23, %v1717_v16 }
0x26a4   :  { %2758 = vtanh.f32 %v1727_v24 }
0x26ae   :  { %v2759_v25 = vpop.eup %2758 }
0x26af   :  { %1730 = vrot.lane.b32.xlu1 %v2759_v25, %s2803_s1 }
0x2721   :  { %v1731_v12 = vpop.permute.xlu1 %1730 }
0x2722   :  { %v3167_v26 = vmul.f32 %v2757_v8, %v1731_v12  ;;  %v3219_v8 = vld [vmem:[%s3294_s3 + $0x21] ss:$0 sm:$0xff] }
0x2724   :  { %v1809_v27 = vpack.c.bf16 %v3167_v26, %v3167_v26 }
0x2726   :  { %1811 = vrot.lane.b32.xlu0 %v1809_v27, %s2804_s5 }
0x2798   :  { %v1812_v29 = vpop.permute.xlu0 %1811 }
0x2799   :  { %2557 = vmatmul.mubr.msk.bf16.vlgmr.msra.gmra.mrb[48].mxu0 %vm136_vm3, %v1812_v29 }
0x279a   :  { %2572 = vmatpush3.bf16.msra.mxu0 %v3043_v53  ;;  %2575 = vmatprep.mubr.msk.bf16.mxu0 %vm2801_vm2, %v2800_v2 }
0x279b   :  { %2573 = vmatprep.subr.bf16.mxu0 %v2800_v2 }
0x279e   :  { %2574 = vmatpush3.bf16.msra.mxu0 %v3053_v21 }
0x286c   :  { %v1850_v30 = vpop.f32.mrb[48].mxu0 }
0x286d   :  { %v1856_v31 = vadd.f32 %v1850_v30, %v3081_v9  ;;  %v2558_v32 = vpop.f32.mrb[49].mxu0 }
0x286e   :  { %v1853_v17 = vpop.f32.mrb[50].mxu0 }
0x286f   :  { %v2237_v14 = vmul.f32 -1.442695, %v1856_v31  ;;  %v2559_v33 = vpop.f32.mrb[51].mxu0 }
0x2871   :  { %2760 = vpow2.f32 %v2237_v14 }
0x287b   :  { %v2761_v18 = vpop.eup %2760 }
0x287c   :  { %v1860_v37 = vadd.f32 1.0, %v2761_v18 }
0x287e   :  { %2762 = vrcp.f32 %v1860_v37 }
0x2888   :  { %v2763_v38 = vpop.eup %2762 }
0x2889   :  { %v1863_v53 = vmul.f32 2.0, %v2763_v38  ;;  %v1865_v21 = vmul.f32 %v2763_v38, %v1727_v24 }
0x288b   :  { %v2238_v3 = vadd.f32 -1.0, %v1863_v53 }
0x288d   :  { %1867 = vrot.lane.b32.xlu1 %v2238_v3, %s2803_s1 }
0x28ff   :  { %v1868_v39 = vpop.permute.xlu1 %1867 }
0x2900   :  { %v1870_v40 = vmul.f32 %v2763_v38, %v1868_v39 }
0x2902   :  { %1872 = vrot.lane.b32.xlu0 %v1870_v40, %s2804_s5 }
0x2974   :  { %v1873_v41 = vpop.permute.xlu0 %1872 }
0x2975   :  { %v1875_v10 = vadd.f32 %v1873_v41, %v1865_v21 }
0x2977   :  { %2764 = vtanh.f32 %v1875_v10 }
0x2981   :  { %v2765_v43 = vpop.eup %2764 }
0x2982   :  { %1878 = vrot.lane.b32.xlu1 %v2765_v43, %s2803_s1 }
0x29f4   :  { %v1879_v15 = vpop.permute.xlu1 %1878 }
0x29f5   :  { %v1881_v44 = vmul.f32 %v2763_v38, %v1879_v15 }
0x29f7   :  { %v1957_v45 = vpack.c.bf16 %v1881_v44, %v1881_v44 }
0x29f9   :  { %1959 = vrot.lane.b32.xlu0 %v1957_v45, %s2804_s5 }
0x2a6b   :  { %v1960_v47 = vpop.permute.xlu0 %1959 }
0x2a6c   :  { %2576 = vmatmul.mubr.msk.bf16.vlgmr.msra.gmra.mrb[52].mxu0 %vm136_vm3, %v1960_v47 }
0x2b3f   :  { %v1998_v48 = vpop.f32.mrb[52].mxu0 }
0x2b40   :  { %v2004_v49 = vadd.f32 %v1998_v48, %v3081_v9  ;;  %v2577_v50 = vpop.f32.mrb[53].mxu0  ;;  %v3197_v9 = vld [vmem:[%s3294_s3 + $0x20] ss:$0 sm:$0xff]  ;;  %s2807_s3 = smov 36  }
0x2b41   :  { %v2001_v51 = vpop.f32.mrb[54].mxu0 }
0x2b42   :  { %v2241_v52 = vmul.f32 -1.442695, %v2004_v49  ;;  %v2578_v55 = vpop.f32.mrb[55].mxu0 }
0x2b44   :  { %2766 = vpow2.f32 %v2241_v52 }
0x2b4e   :  { %v2767_v56 = vpop.eup %2766 }
0x2b4f   :  { %v2008_v57 = vadd.f32 1.0, %v2767_v56 }
0x2b51   :  { %2768 = vrcp.f32 %v2008_v57 }
0x2b5b   :  { %v2769_v59 = vpop.eup %2768 }
0x2b5c   :  { %v2011_v60 = vmul.f32 2.0, %v2769_v59  ;;  %v2013_v0 = vmul.f32 %v2769_v59, %v1875_v10 }
0x2b5e   :  { %v2242_v61 = vadd.f32 -1.0, %v2011_v60 }
0x2b60   :  { %2015 = vrot.lane.b32.xlu1 %v2242_v61, %s2803_s1 }
0x2bd2   :  { %v2016_v62 = vpop.permute.xlu1 %2015 }
0x2bd3   :  { %v2018_v63 = vmul.f32 %v2769_v59, %v2016_v62 }
0x2bd5   :  { %2020 = vrot.lane.b32.xlu0 %v2018_v63, %s2804_s5 }
0x2bd9   :  { %995 = vrot.lane.b32.xlu0 %v3087_v28, %s2804_s5 }
0x2bdd   :  { %1291 = vrot.lane.b32.xlu0 %v3119_v7, %s2804_s5 }
0x2be1   :  { %1587 = vrot.lane.b32.xlu0 %v3151_v11, %s2804_s5 }
0x2be5   :  { %1883 = vrot.lane.b32.xlu0 %v1881_v44, %s2804_s5 }
0x2be9   :  { %747 = vrot.lane.b32.xlu0 %v3197_v9, %s2805_s21 }
0x2c47   :  { %v2021_v1 = vpop.permute.xlu0 %2020 }
0x2c48   :  { %v2023_v4 = vadd.f32 %v2021_v1, %v2013_v0 }
0x2c4a   :  { %2770 = vtanh.f32 %v2023_v4 }
0x2c4b   :  { %v996_v28 = vpop.permute.xlu0 %995 }
0x2c4c   :  { %2455 = vmatmul.mubr.msk.f32.vlgmr.msra.gmra.mrb[24].mxu1 %vm136_vm3, %v996_v28 }
0x2c4d   :  { %2604 = vmatpush3.bf16.msra.mxu1 %v3014_v34  ;;  %2473 = vmatprep.mubr.msk.f32.mxu1 %vm2801_vm2, %v2800_v2 }
0x2c4e   :  { %2605 = vmatprep.subr.bf16.mxu1 %v2806_v42 }
0x2c51   :  { %2607 = vmatpush3.bf16.msra.mxu1 %v3022_v36 }
0x2c52   :  { %2608 = vmatprep.subr.bf16.mxu1 %v2806_v42 }
0x2c54   :  { %v2771_v7 = vpop.eup %2770 }
0x2c55   :  { %2026 = vrot.lane.b32.xlu1 %v2771_v7, %s2803_s1 }
0x2c59   :  { %1143 = vrot.lane.b32.xlu1 %v3103_v46, %s2804_s5  ;;  %v1292_v46 = vpop.permute.xlu0 %1291 }
0x2c5d   :  { %1439 = vrot.lane.b32.xlu1 %v3135_v35, %s2804_s5  ;;  %v1588_v19 = vpop.permute.xlu0 %1587 }
0x2c61   :  { %1735 = vrot.lane.b32.xlu1 %v3167_v26, %s2804_s5  ;;  %v1884_v22 = vpop.permute.xlu0 %1883 }
0x2c65   :  { %v748_v24 = vpop.permute.xlu0 %747 }
0x2c66   :  { %v819_v25 = vadd.f32 %v3077_v58, %v748_v24 }
0x2cc7   :  { %v2027_v11 = vpop.permute.xlu1 %2026 }
0x2cc8   :  { %v2029_v5 = vmul.f32 %v2769_v59, %v2027_v11 }
0x2cca   :  { %2031 = vrot.lane.b32.xlu1 %v2029_v5, %s2804_s5 }
0x2ccb   :  { %v1144_v6 = vpop.permute.xlu1 %1143 }
0x2ccc   :  { %2474 = vmatmul.mubr.msk.f32.vlgmr.msra.gmra.mrb[26].mxu1 %vm136_vm3, %v1144_v6 }
0x2ccd   :  { %2610 = vmatpush3.bf16.msra.mxu1 %v3014_v34  ;;  %2492 = vmatprep.mubr.msk.f32.mxu1 %vm2801_vm2, %v2800_v2 }
0x2cce   :  { %828 = vrot.lane.b32.xlu1 %v3219_v8, %s2805_s21  ;;  %2611 = vmatprep.subr.bf16.mxu1 %v2806_v42 }
0x2ccf   :  { %v1440_v35 = vpop.permute.xlu1 %1439 }
0x2cd1   :  { %2613 = vmatpush3.bf16.msra.mxu1 %v3022_v36 }
0x2cd2   :  { %2614 = vmatprep.subr.bf16.mxu1 %v2806_v42 }
0x2cd3   :  { %v1736_v20 = vpop.permute.xlu1 %1735 }
0x2cd4   :  { %2493 = vmatmul.mubr.msk.f32.vlgmr.msra.gmra.mrb[28].mxu1 %vm136_vm3, %v1292_v46 }
0x2cd5   :  { %2616 = vmatpush3.bf16.msra.mxu1 %v3014_v34  ;;  %2511 = vmatprep.mubr.msk.f32.mxu1 %vm2801_vm2, %v2800_v2 }
0x2cd6   :  { %2617 = vmatprep.subr.bf16.mxu1 %v2806_v42 }
0x2cd9   :  { %2619 = vmatpush3.bf16.msra.mxu1 %v3022_v36 }
0x2cda   :  { %2620 = vmatprep.subr.bf16.mxu1 %v2806_v42 }
0x2cdc   :  { %2512 = vmatmul.mubr.msk.f32.vlgmr.msra.gmra.mrb[30].mxu1 %vm136_vm3, %v1440_v35 }
0x2cdd   :  { %2622 = vmatpush3.bf16.msra.mxu1 %v3014_v34  ;;  %2530 = vmatprep.mubr.msk.f32.mxu1 %vm2801_vm2, %v2800_v2 }
0x2cde   :  { %2623 = vmatprep.subr.bf16.mxu1 %v2806_v42 }
0x2ce1   :  { %2625 = vmatpush3.bf16.msra.mxu1 %v3022_v36 }
0x2ce2   :  { %2626 = vmatprep.subr.bf16.mxu1 %v2806_v42 }
0x2ce4   :  { %2531 = vmatmul.mubr.msk.f32.vlgmr.msra.gmra.mrb[32].mxu1 %vm136_vm3, %v1588_v19 }
0x2ce5   :  { %2628 = vmatpush3.bf16.msra.mxu1 %v3014_v34  ;;  %2549 = vmatprep.mubr.msk.f32.mxu1 %vm2801_vm2, %v2800_v2 }
0x2ce6   :  { %2629 = vmatprep.subr.bf16.mxu1 %v2806_v42 }
0x2ce9   :  { %2631 = vmatpush3.bf16.msra.mxu1 %v3022_v36 }
0x2cea   :  { %2632 = vmatprep.subr.bf16.mxu1 %v2806_v42 }
0x2cec   :  { %2550 = vmatmul.mubr.msk.f32.vlgmr.msra.gmra.mrb[34].mxu1 %vm136_vm3, %v1736_v20 }
0x2ced   :  { %2634 = vmatpush3.bf16.msra.mxu1 %v3014_v34  ;;  %2568 = vmatprep.mubr.msk.f32.mxu1 %vm2801_vm2, %v2800_v2 }
0x2cee   :  { %2635 = vmatprep.subr.bf16.mxu1 %v2806_v42 }
0x2cf1   :  { %2637 = vmatpush3.bf16.msra.mxu1 %v3022_v36 }
0x2cf2   :  { %2638 = vmatprep.subr.bf16.mxu1 %v2806_v42 }
0x2cf4   :  { %2569 = vmatmul.mubr.msk.f32.vlgmr.msra.gmra.mrb[36].mxu1 %vm136_vm3, %v1884_v22 }
0x2cf5   :  { %2640 = vmatpush3.bf16.msra.mxu1 %v3014_v34  ;;  %2587 = vmatprep.mubr.msk.f32.mxu1 %vm2801_vm2, %v2800_v2  ;;  %v822_v34 = vmax.f32 %v819_v25, 0.0 }
0x2cf6   :  { %2641 = vmatprep.subr.bf16.mxu1 %v2806_v42 }
0x2cf9   :  { %2643 = vmatpush3.bf16.msra.mxu1 %v3022_v36 }
0x2d1f   :  { %v1065_v13 = vpop.f32.mrb[24].mxu1 }
0x2d20   :  { %v1066_v16 = vadd.f32 %v3197_v9, %v1065_v13  ;;  %v2456_v23 = vpop.f32.mrb[25].mxu1 }
0x2d22   :  { %2107 = vrot.lane.b32.xlu1 %v1066_v16, %s2804_s5  ;;  %s2808_s5 = smov 40  }
0x2d3c   :  { %v2032_v12 = vpop.permute.xlu1 %2031 }
0x2d3d   :  { %2588 = vmatmul.mubr.msk.f32.vlgmr.msra.gmra.mrb[38].mxu1 %vm136_vm3, %v2032_v12 }
0x2d40   :  { %v829_v26 = vpop.permute.xlu1 %828 }
0x2d41   :  { %v831_v2 = vmul.f32 %v829_v26, %v822_v34 }
0x2d43   :  { %v833_v27 = vsel %vm832_vm4, %v831_v2, 0.0 }
0x2d44   :  { %834 = vadd.xlane.f32.xlu0 %v833_v27 }
0x2d94   :  { %v2108_v50 = vpop.permute.xlu1 %2107 }
0x2d95   :  { %v2142_v59 = vsel %vm136_vm3, %v3045_v54, %v2108_v50 }
0x2d9f   :  { %v1213_v42 = vpop.f32.mrb[26].mxu1 }
0x2da0   :  { %v1214_v36 = vadd.f32 %v3197_v9, %v1213_v42  ;;  %v2475_v29 = vpop.f32.mrb[27].mxu1 }
0x2da2   :  { %2111 = vrot.lane.b32.xlu1 %v1214_v36, %s2807_s3 }
0x2da7   :  { %v1361_v30 = vpop.f32.mrb[28].mxu1 }
0x2da8   :  { %v1362_v31 = vadd.f32 %v3197_v9, %v1361_v30  ;;  %v2494_v32 = vpop.f32.mrb[29].mxu1 }
0x2daa   :  { %2115 = vrot.lane.b32.xlu1 %v1362_v31, %s2808_s5 }
0x2daf   :  { %v1509_v58 = vpop.f32.mrb[30].mxu1 }
0x2db0   :  { %v1510_v17 = vadd.f32 %v3197_v9, %v1509_v58  ;;  %v2513_v14 = vpop.f32.mrb[31].mxu1 }
0x2db2   :  { %2119 = vrot.lane.b32.xlu1 %v1510_v17, %s2809_s10 }
0x2db7   :  { %v1657_v33 = vpop.f32.mrb[32].mxu1 }
0x2db8   :  { %v1658_v18 = vadd.f32 %v3197_v9, %v1657_v33  ;;  %v2532_v37 = vpop.f32.mrb[33].mxu1 }
0x2dba   :  { %2123 = vrot.lane.b32.xlu1 %v1658_v18, %s2810_s11 }
0x2dbf   :  { %v1805_v38 = vpop.f32.mrb[34].mxu1 }
0x2dc0   :  { %v1806_v53 = vadd.f32 %v3197_v9, %v1805_v38  ;;  %v2551_v3 = vpop.f32.mrb[35].mxu1 }
0x2dc2   :  { %2127 = vrot.lane.b32.xlu1 %v1806_v53, %s2811_s12 }
0x2dc7   :  { %v1953_v39 = vpop.f32.mrb[36].mxu1 }
0x2dc8   :  { %v1954_v40 = vadd.f32 %v3197_v9, %v1953_v39  ;;  %v2570_v21 = vpop.f32.mrb[37].mxu1 }
0x2dca   :  { %2131 = vrot.lane.b32.xlu1 %v1954_v40, %s2812_s13 }
0x2dd1   :  { %v835_v41 = vpop.xlane.xlu0 %834 }
0x2dd2   :  { %v836_v10 = vadd.f32 %v3219_v8, %v835_v41 }
0x2dd4   :  { %v2207_v43 = vmul.f32 -1.442695, %v836_v10 }
0x2dd6   :  { %2772 = vpow2.f32 %v2207_v43 }
0x2de0   :  { %v2773_v15 = vpop.eup %2772 }
0x2de1   :  { %v840_v44 = vadd.f32 1.0, %v2773_v15 }
0x2de3   :  { %2774 = vrcp.f32 %v840_v44 }
0x2ded   :  { %v2775_v45 = vpop.eup %2774 }
0x2dee   :  { %2139 = vrot.lane.b32.xlu0 %v2775_v45, %s2803_s1  ;;  %s2814_s1 = smov [#allocation2]  }
0x2def   :  { %s2167_s14 = sshll.u32 %s2814_s1, 4  ;;  %s2168_s14 = int_to_ptr.vmem [resolvable:$true] %s2167_s14 }
0x2df0   :  { %s2776_s15 = scalar_lea.vmem %s2168_s14, 128  ;;  %p2781_p1 = scmp.lt.s32.totalorder %s2168_s14, %s2168_s14 }
0x2df1   :  { %p2777_p0 = scmp.ne.s32.totalorder %s2168_s14, %s2776_s15  ;;  %p2782_p2 = scmp.lt.s32.totalorder %s2776_s15, %s2776_s15 }
0x2df3   :  { %p2783_p3 = por %p2782_p2, %p2781_p1 }
0x2df5   :  { %p2784_p4 = pnand %p2783_p3, %p2777_p0 }
0x2e10   :  { %v2101_v47 = vpop.f32.mrb[38].mxu1 }
0x2e11   :  { %v2102_v48 = vadd.f32 %v3197_v9, %v2101_v47  ;;  %v2589_v49 = vpop.f32.mrb[39].mxu1 }
0x2e13   :  { %2135 = vrot.lane.b32.xlu1 %v2102_v48, %s2813_s0 }
0x2e14   :  { %v2112_v51 = vpop.permute.xlu1 %2111 }
0x2e15   :  { %v2144_v60 = vsel %vm2143_vm5, %v2142_v59, %v2112_v51 }
0x2e1c   :  { %v2116_v52 = vpop.permute.xlu1 %2115 }
0x2e1d   :  { %v2146_v61 = vsel %vm2145_vm6, %v2144_v60, %v2116_v52 }
0x2e24   :  { %v2120_v55 = vpop.permute.xlu1 %2119 }
0x2e25   :  { %v2148_v63 = vsel %vm2147_vm7, %v2146_v61, %v2120_v55 }
0x2e2c   :  { %v2124_v56 = vpop.permute.xlu1 %2123 }
0x2e2d   :  { %v2150_v9 = vsel %vm2149_vm8, %v2148_v63, %v2124_v56 }
0x2e34   :  { %v2128_v57 = vpop.permute.xlu1 %2127 }
0x2e35   :  { %v2152_v0 = vsel %vm2151_vm9, %v2150_v9, %v2128_v57 }
0x2e3c   :  { %v2132_v62 = vpop.permute.xlu1 %2131 }
0x2e3d   :  { %v2154_v1 = vsel %vm2153_vm10, %v2152_v0, %v2132_v62 }
0x2e60   :  { %v2140_v28 = vpop.permute.xlu0 %2139 }
0x2e85   :  { %v2136_v4 = vpop.permute.xlu1 %2135 }
0x2e86   :  { %v2156_v7 = vsel %vm2155_vm11, %v2154_v1, %v2136_v4 }
0x2e87   :  { %v2158_v54 = vsel %vm2157_vm12, %v2156_v7, %v2140_v28 }
0x2e88   :  { %2160 = vst.msk [vmem:[#allocation2] sm:$0xff] %vm2159_vm13, %v2158_v54 }
0x2e89   :  { %2787 = shalt.err (!%p2784_p4)
}
0x2e8a   :  { %s2788_s18 = scalar_lea.hbm %s3295_s4, 128 }
0x2e8b   :  { %p2789_p5 = scmp.ne.s32.totalorder %s3295_s4, %s2788_s18  ;;  %p2792_p6 = scmp.lt.u32.totalorder %s2788_s18, %s3295_s4 }
0x2e8d   :  { %p2794_p7 = pnand %p2792_p6, %p2789_p5 }
0x2e8f   :  { %2797 = shalt.err (!%p2794_p7)
}
0x2e90   :  { %2170 = dma.vmem_to_hbm [thread:$0]  %s2168_s14, 128, %s3295_s4, [#allocation3]  }
0x2e91   :  { %2798 = dma.done.wait [#allocation3], 128  }
0x2e92   :  { %2799 = vsyncadd [#allocation3], 4294967168 }
0x2e93   :  { %2174 = vsyncpa [#allocation3], 1 }

</bundles_post_ra>
